<compile_context>
chip_gen: v7x
topology: tpu7x:2x2x1
jax: 0.10.0
libtpu: 0.0.40
codegen_flags: <defaults>
</compile_context>

<pallas_src>
import math

import jax
import jax.numpy as jnp
from jax.experimental import pallas as pl
from jax.experimental.pallas import tpu as pltpu

_LANE = 128


def _round_up(n, m):
    return ((n + m - 1) // m) * m


def _ctc_kernel(x_ref, w1_ref, b1_ref, w2_ref, b2_ref, w3_ref, b3_ref,
                fcw_ref, fcb_ref, out_ref,
                pad2_ref, h2_ref, pad3_ref, h3_ref, flat_ref):
    TB, L, Cin = x_ref.shape
    Lh = L // 2
    C1p = w1_ref.shape[2]
    C2p = w2_ref.shape[2]
    C3p = w3_ref.shape[2]
    bf16 = jnp.bfloat16

    # ---- conv1d_1 (kernel_size=1, 'same') + ReLU as a VPU broadcast FMA -------------
    # Cin == num_reads is tiny; a K=Cin MXU matmul would waste ~the whole systolic
    # array, so do a lane-broadcast multiply-add on the VPU instead.
    x3 = x_ref[...]                                    # (TB, L, Cin) f32
    w1v = w1_ref[...]                                  # (Cin, 1, C1p) f32
    h1 = b1_ref[...]                                   # (1, 1, C1p), broadcasts below
    for ci in range(Cin):                              # static unroll; Cin is tiny
        h1 = h1 + x3[:, :, ci:ci + 1] * w1v[ci]        # (TB,L,1)*(1,C1p) -> (TB,L,C1p)
    h1 = jnp.maximum(h1, 0.0)                          # (TB, L, C1p) f32

    # ---- conv1d_2 (kernel_size=3, 'same') via zero-padded scratch + 3 matmuls -------
    zrow1 = jnp.zeros((TB, 1, C1p), jnp.float32)
    pad2_ref[:, pl.ds(0, 1), :] = zrow1                # boundary rows re-zeroed every
    pad2_ref[:, pl.ds(L + 1, 1), :] = zrow1            # step (safe with parallel grid)
    pad2_ref[:, pl.ds(1, L), :] = h1

    def tap2(t):
        return pad2_ref[:, pl.ds(t, L), :].reshape(TB * L, C1p).astype(bf16)

    h2 = (jnp.dot(tap2(0), w2_ref[0], preferred_element_type=jnp.float32)
          + jnp.dot(tap2(1), w2_ref[1], preferred_element_type=jnp.float32)
          + jnp.dot(tap2(2), w2_ref[2], preferred_element_type=jnp.float32)
          + b2_ref[...])                               # (TB*L, C2p) f32
    h2_ref[...] = h2

    # ---- MaxPool2d((1, 2)) over time via sublane-strided loads ----------------------
    # h2 rows are (batch-major, time-minor) and L is even, so even/odd flat rows are
    # exactly the even/odd time steps of every batch element.
    pooled = jnp.maximum(h2_ref[pl.ds(0, TB * Lh, 2), :],
                         h2_ref[pl.ds(1, TB * Lh, 2), :])      # (TB*Lh, C2p)

    # ---- conv1d_3 (kernel_size=3, padding=1) ----------------------------------------
    zrow2 = jnp.zeros((TB, 1, C2p), jnp.float32)
    pad3_ref[:, pl.ds(0, 1), :] = zrow2
    pad3_ref[:, pl.ds(Lh + 1, 1), :] = zrow2
    pad3_ref[:, pl.ds(1, Lh), :] = pooled.reshape(TB, Lh, C2p)

    def tap3(t):
        return pad3_ref[:, pl.ds(t, Lh), :].reshape(TB * Lh, C2p).astype(bf16)

    h3 = (jnp.dot(tap3(0), w3_ref[0], preferred_element_type=jnp.float32)
          + jnp.dot(tap3(1), w3_ref[1], preferred_element_type=jnp.float32)
          + jnp.dot(tap3(2), w3_ref[2], preferred_element_type=jnp.float32)
          + b3_ref[...])                               # (TB*Lh, C3p) f32
    h3_ref[...] = h3

    # TODO(synk): nn.TransformerEncoder in the original forward discards its result
    # (`self.transformer(x)` is never assigned), so it is intentionally omitted.

    # ---- flatten (time-major, channel-minor) + fc1 as ONE big matmul ----------------
    # Each time-step slab (stride-Lh sublane gather) is staged into a 128-aligned lane
    # band of a VMEM scratch; no giant in-register lane-concat that would spill vregs.
    for p in range(Lh):                                # static unroll
        flat_ref[:, pl.ds(p * C3p, C3p)] = h3_ref[pl.ds(p, TB, Lh), :]
    out = (jnp.dot(flat_ref[...].astype(bf16), fcw_ref[...],
                   preferred_element_type=jnp.float32)
           + fcb_ref[...])                             # (TB, OUTp) f32
    out_ref[...] = out.astype(out_ref.dtype)


def ctc_test_forward(x_nlc, params, *, tar_length, tar_len_multiple, classes,
                     block_b=None):
    """x_nlc: (B, L, num_reads) float32.  Returns (B, tar_length*tar_len_multiple, classes)."""
    B, L, Cin = x_nlc.shape
    assert L % 2 == 0, "MaxPool2d((1, 2)) requires an even input length"
    Lh = L // 2
    # Layout requirement of this kernel: keeps every reshape a pure sublane relabel.
    assert L % 8 == 0 and Lh % 8 == 0, "kernel requires L and L//2 to be multiples of 8"

    w1, b1, w2, b2, w3, b3, fcw, fcb = params
    C1, C2, C3 = w1.shape[1], w2.shape[2], w3.shape[2]
    OUT = fcw.shape[2]
    assert OUT == classes * tar_len_multiple * tar_length

    f32, bf16 = jnp.float32, jnp.bfloat16
    C1p, C2p, C3p, OUTp = (_round_up(c, _LANE) for c in (C1, C2, C3, OUT))

    def pad_to(a, shape, dtype):
        a = a.astype(f32)
        a = jnp.pad(a, [(0, t - s) for s, t in zip(a.shape, shape)])
        return a.astype(dtype)

    # Biases and the k=1 weight stay f32 (VPU path); conv2/conv3/fc weights feed the
    # MXU and are shipped as bf16 (accumulation stays f32 inside the kernel).
    w1p = pad_to(w1, (Cin, C1p), f32).reshape(Cin, 1, C1p)
    b1p = pad_to(b1, (1, C1p), f32).reshape(1, 1, C1p)
    w2p = pad_to(w2, (3, C1p, C2p), bf16)
    b2p = pad_to(b2, (1, C2p), f32)
    w3p = pad_to(w3, (3, C2p, C3p), bf16)
    b3p = pad_to(b3, (1, C3p), f32)
    # fc weight is supplied per time step as (Lh, C3, OUT), matching PyTorch's
    # time-major/channel-minor flatten: fcw[p, c, o] == fc1.weight[o, p*C3 + c].
    fcw2d = pad_to(fcw, (Lh, C3p, OUTp), bf16).reshape(Lh * C3p, OUTp)
    fcbp = pad_to(fcb, (1, OUTp), f32)

    # Batch tiling: fold as much of B as possible into the matmul M dimension, keep TB
    # a multiple of 8 (sublane-aligned out tile, pure-relabel reshapes), and give the
    # grid >= 2 steps for large B so "parallel" can shard across both TCs on v7x.
    if block_b is not None:
        TB = _round_up(block_b, 8)
    elif B > 8:
        TB = min(_round_up((B + 1) // 2, 8), 256)
    else:
        TB = _round_up(B, 8)
    Bp = _round_up(B, TB)
    xp = x_nlc.astype(f32)
    if Bp != B:
        xp = jnp.pad(xp, ((0, Bp - B), (0, 0), (0, 0)))

    # Explicit VMEM budget (pipeline double-buffers the blocks; scratch is single).
    def nbytes(shape, dtype):
        return math.prod(shape) * jnp.dtype(dtype).itemsize

    block_bytes = (nbytes((TB, L, Cin), f32) + nbytes((TB, OUTp), f32)
                   + nbytes((Cin, 1, C1p), f32) + nbytes((1, 1, C1p), f32)
                   + nbytes((3, C1p, C2p), bf16) + nbytes((1, C2p), f32)
                   + nbytes((3, C2p, C3p), bf16) + nbytes((1, C3p), f32)
                   + nbytes((Lh * C3p, OUTp), bf16) + nbytes((1, OUTp), f32))
    scratch_bytes = (nbytes((TB, L + 2, C1p), f32) + nbytes((TB * L, C2p), f32)
                     + nbytes((TB, Lh + 2, C2p), f32) + nbytes((TB * Lh, C3p), f32)
                     + nbytes((TB, Lh * C3p), f32))
    vmem_needed = 2 * block_bytes + scratch_bytes
    assert vmem_needed < (56 << 20), f"VMEM budget too large for v7x: {vmem_needed} B"
    vmem_limit = int(min(max(vmem_needed + (4 << 20), 32 << 20), 64 << 20))

    out = pl.pallas_call(
        _ctc_kernel,
        out_shape=jax.ShapeDtypeStruct((Bp, OUTp), f32),
        grid_spec=pltpu.PrefetchScalarGridSpec(
            num_scalar_prefetch=0,
            grid=(Bp // TB,),
            in_specs=[
                pl.BlockSpec((TB, L, Cin), lambda b: (b, 0, 0)),
                pl.BlockSpec((Cin, 1, C1p), lambda b: (0, 0, 0)),
                pl.BlockSpec((1, 1, C1p), lambda b: (0, 0, 0)),
                pl.BlockSpec((3, C1p, C2p), lambda b: (0, 0, 0)),
                pl.BlockSpec((1, C2p), lambda b: (0, 0)),
                pl.BlockSpec((3, C2p, C3p), lambda b: (0, 0, 0)),
                pl.BlockSpec((1, C3p), lambda b: (0, 0)),
                pl.BlockSpec((Lh * C3p, OUTp), lambda b: (0, 0)),
                pl.BlockSpec((1, OUTp), lambda b: (0, 0)),
            ],
            out_specs=pl.BlockSpec((TB, OUTp), lambda b: (b, 0)),
            scratch_shapes=[
                pltpu.VMEM((TB, L + 2, C1p), f32),    # zero-padded conv2 input
                pltpu.VMEM((TB * L, C2p), f32),       # conv2 output (strided pooling)
                pltpu.VMEM((TB, Lh + 2, C2p), f32),   # zero-padded conv3 input
                pltpu.VMEM((TB * Lh, C3p), f32),      # conv3 output (flatten gather)
                pltpu.VMEM((TB, Lh * C3p), f32),      # flattened fc input
            ],
        ),
        compiler_params=pltpu.CompilerParams(
            dimension_semantics=("parallel",),
            vmem_limit_bytes=vmem_limit),
    )(xp, w1p, b1p, w2p, b2p, w3p, b3p, fcw2d, fcbp)

    out = out[:B, :OUT]
    return out.reshape(B, tar_length * tar_len_multiple, classes)


def reference_forward(x_nlc, params, *, tar_length, tar_len_multiple, classes):
    """Pure-JAX f32 reference for correctness checking."""
    w1, b1, w2, b2, w3, b3, fcw, fcb = params
    B, L, _ = x_nlc.shape
    Lh = L // 2
    C3 = w3.shape[2]
    OUT = fcw.shape[2]
    h1 = jnp.maximum(jnp.einsum('blc,cd->bld', x_nlc, w1) + b1, 0.0)
    h1p = jnp.pad(h1, ((0, 0), (1, 1), (0, 0)))
    h2 = sum(jnp.einsum('blc,cd->bld', h1p[:, t:t + L, :], w2[t]) for t in range(3)) + b2
    pooled = jnp.max(h2.reshape(B, Lh, 2, -1), axis=2)
    pp = jnp.pad(pooled, ((0, 0), (1, 1), (0, 0)))
    h3 = sum(jnp.einsum('blc,cd->bld', pp[:, t:t + Lh, :], w3[t]) for t in range(3)) + b3
    flat = h3.reshape(B, Lh * C3)
    out = flat @ fcw.reshape(Lh * C3, OUT) + fcb
    return out.reshape(B, tar_length * tar_len_multiple, classes)


if __name__ == "__main__":
    # Small, module-consistent configuration.
    B = 2
    input_length = 16          # L
    num_reads = 1              # C_in
    conv_1_dim = 10            # C1
    conv_2_dim = 20            # C2
    attention_dim = 40         # C3
    classes = 5
    tar_length = 8
    tar_len_multiple = 2
    Lh = input_length // 2
    OUT = classes * tar_len_multiple * tar_length

    key = jax.random.PRNGKey(0)
    ks = jax.random.split(key, 9)
    s = 0.1
    w1 = s * jax.random.normal(ks[0], (num_reads, conv_1_dim), jnp.float32)
    b1 = s * jax.random.normal(ks[1], (1, conv_1_dim), jnp.float32)
    w2 = s * jax.random.normal(ks[2], (3, conv_1_dim, conv_2_dim), jnp.float32)
    b2 = s * jax.random.normal(ks[3], (1, conv_2_dim), jnp.float32)
    w3 = s * jax.random.normal(ks[4], (3, conv_2_dim, attention_dim), jnp.float32)
    b3 = s * jax.random.normal(ks[5], (1, attention_dim), jnp.float32)
    fcw = s * jax.random.normal(ks[6], (Lh, attention_dim, OUT), jnp.float32)
    fcb = s * jax.random.normal(ks[7], (1, OUT), jnp.float32)
    params = (w1, b1, w2, b2, w3, b3, fcw, fcb)

    # Input in PyTorch layout (B, num_reads, L), transposed to channel-last for the kernel.
    x_ncl = jax.random.normal(ks[8], (B, num_reads, input_length), jnp.float32)
    x_nlc = jnp.transpose(x_ncl, (0, 2, 1))

    out = ctc_test_forward(x_nlc, params, tar_length=tar_length,
                           tar_len_multiple=tar_len_multiple, classes=classes)
    out = jax.block_until_ready(out)

    ref = reference_forward(x_nlc, params, tar_length=tar_length,
                            tar_len_multiple=tar_len_multiple, classes=classes)
    ref = jax.block_until_ready(ref)

    assert out.shape == (B, tar_length * tar_len_multiple, classes), out.shape
    max_err = float(jnp.max(jnp.abs(out - ref)))
    # bf16 MXU operands (f32 accumulation) vs. an f32 reference.
    assert jnp.allclose(out, ref, rtol=3e-2, atol=3e-2), f"max abs err = {max_err}"

    print("KERNEL_OK")
</pallas_src>

<mosaic_0001>
module attributes {stable_mosaic.version = 11 : i64} {
  func.func @_ctc_kernel(%arg0: i32, %arg1: memref<8x16x1xf32, #tpu.memory_space<vmem>>, %arg2: memref<1x1x128xf32, #tpu.memory_space<vmem>>, %arg3: memref<1x1x128xf32, #tpu.memory_space<vmem>>, %arg4: memref<3x128x128xbf16, #tpu.memory_space<vmem>>, %arg5: memref<1x128xf32, #tpu.memory_space<vmem>>, %arg6: memref<3x128x128xbf16, #tpu.memory_space<vmem>>, %arg7: memref<1x128xf32, #tpu.memory_space<vmem>>, %arg8: memref<1024x128xbf16, #tpu.memory_space<vmem>>, %arg9: memref<1x128xf32, #tpu.memory_space<vmem>>, %arg10: memref<8x128xf32, #tpu.memory_space<vmem>>, %arg11: memref<8x18x128xf32, #tpu.memory_space<vmem>>, %arg12: memref<128x128xf32, #tpu.memory_space<vmem>>, %arg13: memref<8x10x128xf32, #tpu.memory_space<vmem>>, %arg14: memref<64x128xf32, #tpu.memory_space<vmem>>, %arg15: memref<8x1024xf32, #tpu.memory_space<vmem>>) attributes {dimension_semantics = [#tpu.dimension_semantics<parallel>], iteration_bounds = array<i64: 1>, scalar_prefetch = 0 : i64, scratch_operands = 5 : i64, tpu.core_type = #tpu.core_type<tc>, window_params = [{transform_indices = @transform_0, window_bounds = array<i64: 8, 16, 1>}, {pipeline_mode = #tpu.pipeline_mode<synchronous>, transform_indices = @transform_1, window_bounds = array<i64: 1, 1, 128>}, {pipeline_mode = #tpu.pipeline_mode<synchronous>, transform_indices = @transform_2, window_bounds = array<i64: 1, 1, 128>}, {pipeline_mode = #tpu.pipeline_mode<synchronous>, transform_indices = @transform_3, window_bounds = array<i64: 3, 128, 128>}, {pipeline_mode = #tpu.pipeline_mode<synchronous>, transform_indices = @transform_4, window_bounds = array<i64: 1, 128>}, {pipeline_mode = #tpu.pipeline_mode<synchronous>, transform_indices = @transform_5, window_bounds = array<i64: 3, 128, 128>}, {pipeline_mode = #tpu.pipeline_mode<synchronous>, transform_indices = @transform_6, window_bounds = array<i64: 1, 128>}, {pipeline_mode = #tpu.pipeline_mode<synchronous>, transform_indices = @transform_7, window_bounds = array<i64: 1024, 128>}, {pipeline_mode = #tpu.pipeline_mode<synchronous>, transform_indices = @transform_8, window_bounds = array<i64: 1, 128>}, {transform_indices = @transform_9, window_bounds = array<i64: 8, 128>}]} {
    %c0 = arith.constant 0 : index
    %c0_0 = arith.constant 0 : index
    %c0_1 = arith.constant 0 : index
    %0 = vector.load %arg1[%c0, %c0_0, %c0_1] : memref<8x16x1xf32, #tpu.memory_space<vmem>>, vector<8x16x1xf32>
    %c0_2 = arith.constant 0 : index
    %c0_3 = arith.constant 0 : index
    %c0_4 = arith.constant 0 : index
    %1 = vector.load %arg2[%c0_2, %c0_3, %c0_4] : memref<1x1x128xf32, #tpu.memory_space<vmem>>, vector<1x1x128xf32>
    %c0_5 = arith.constant 0 : index
    %c0_6 = arith.constant 0 : index
    %c0_7 = arith.constant 0 : index
    %2 = vector.load %arg3[%c0_5, %c0_6, %c0_7] : memref<1x1x128xf32, #tpu.memory_space<vmem>>, vector<1x1x128xf32>
    %3 = vector.shape_cast %1 : vector<1x1x128xf32> to vector<1x128xf32>
    %4 = vector.shape_cast %3 : vector<1x128xf32> to vector<1x1x128xf32>
    %5 = vector.broadcast %0 : vector<8x16x1xf32> to vector<8x16x128xf32>
    %6 = vector.broadcast %4 : vector<1x1x128xf32> to vector<8x16x128xf32>
    %7 = arith.mulf %5, %6 : vector<8x16x128xf32>
    %8 = vector.broadcast %2 : vector<1x1x128xf32> to vector<8x16x128xf32>
    %9 = arith.addf %8, %7 : vector<8x16x128xf32>
    %cst = arith.constant 0.000000e+00 : f32
    %10 = vector.broadcast %cst : f32 to vector<8x16x128xf32>
    %11 = arith.maximumf %9, %10 : vector<8x16x128xf32>
    %cst_8 = arith.constant 0.000000e+00 : f32
    %12 = vector.broadcast %cst_8 : f32 to vector<8x1x128xf32>
    %c0_9 = arith.constant 0 : index
    %c0_10 = arith.constant 0 : index
    %c0_11 = arith.constant 0 : index
    %13 = vector.load %arg11[%c0_9, %c0_10, %c0_11] : memref<8x18x128xf32, #tpu.memory_space<vmem>>, vector<8x1x128xf32>
    tpu.vector_store %arg11[%c0_9, %c0_10, %c0_11], %12 {strides = array<i32>} : memref<8x18x128xf32, #tpu.memory_space<vmem>>, vector<8x1x128xf32>,
    %c0_12 = arith.constant 0 : index
    %c17 = arith.constant 17 : index
    %c0_13 = arith.constant 0 : index
    %14 = vector.load %arg11[%c0_12, %c17, %c0_13] : memref<8x18x128xf32, #tpu.memory_space<vmem>>, vector<8x1x128xf32>
    tpu.vector_store %arg11[%c0_12, %c17, %c0_13], %12 {strides = array<i32>} : memref<8x18x128xf32, #tpu.memory_space<vmem>>, vector<8x1x128xf32>,
    %c0_14 = arith.constant 0 : index
    %c1 = arith.constant 1 : index
    %c0_15 = arith.constant 0 : index
    %15 = vector.load %arg11[%c0_14, %c1, %c0_15] : memref<8x18x128xf32, #tpu.memory_space<vmem>>, vector<8x16x128xf32>
    tpu.vector_store %arg11[%c0_14, %c1, %c0_15], %11 {strides = array<i32>} : memref<8x18x128xf32, #tpu.memory_space<vmem>>, vector<8x16x128xf32>,
    %c0_16 = arith.constant 0 : index
    %c0_17 = arith.constant 0 : index
    %c0_18 = arith.constant 0 : index
    %16 = vector.load %arg11[%c0_16, %c0_17, %c0_18] : memref<8x18x128xf32, #tpu.memory_space<vmem>>, vector<8x16x128xf32>
    %17 = vector.shape_cast %16 : vector<8x16x128xf32> to vector<128x128xf32>
    %18 = arith.truncf %17 : vector<128x128xf32> to vector<128x128xbf16>
    %c0_19 = arith.constant 0 : index
    %c0_20 = arith.constant 0 : index
    %c0_21 = arith.constant 0 : index
    %19 = vector.load %arg4[%c0_19, %c0_20, %c0_21] : memref<3x128x128xbf16, #tpu.memory_space<vmem>>, vector<1x128x128xbf16>
    %20 = vector.shape_cast %19 : vector<1x128x128xbf16> to vector<128x128xbf16>
    %cst_22 = arith.constant dense<0.000000e+00> : vector<128x128xf32>
    %21 = tpu.matmul %18, %20, %cst_22 {dimension_numbers = #tpu.dot_dimension_numbers<[1], [0], [0], [1], [0, 0, 1, 1], [], []>} : vector<128x128xbf16>, vector<128x128xbf16>, vector<128x128xf32> -> vector<128x128xf32>
    %c0_23 = arith.constant 0 : index
    %c1_24 = arith.constant 1 : index
    %c0_25 = arith.constant 0 : index
    %22 = vector.load %arg11[%c0_23, %c1_24, %c0_25] : memref<8x18x128xf32, #tpu.memory_space<vmem>>, vector<8x16x128xf32>
    %23 = vector.shape_cast %22 : vector<8x16x128xf32> to vector<128x128xf32>
    %24 = arith.truncf %23 : vector<128x128xf32> to vector<128x128xbf16>
    %c1_26 = arith.constant 1 : index
    %c0_27 = arith.constant 0 : index
    %c0_28 = arith.constant 0 : index
    %25 = vector.load %arg4[%c1_26, %c0_27, %c0_28] : memref<3x128x128xbf16, #tpu.memory_space<vmem>>, vector<1x128x128xbf16>
    %26 = vector.shape_cast %25 : vector<1x128x128xbf16> to vector<128x128xbf16>
    %cst_29 = arith.constant dense<0.000000e+00> : vector<128x128xf32>
    %27 = tpu.matmul %24, %26, %cst_29 {dimension_numbers = #tpu.dot_dimension_numbers<[1], [0], [0], [1], [0, 0, 1, 1], [], []>} : vector<128x128xbf16>, vector<128x128xbf16>, vector<128x128xf32> -> vector<128x128xf32>
    %28 = arith.addf %21, %27 : vector<128x128xf32>
    %c0_30 = arith.constant 0 : index
    %c2 = arith.constant 2 : index
    %c0_31 = arith.constant 0 : index
    %29 = vector.load %arg11[%c0_30, %c2, %c0_31] : memref<8x18x128xf32, #tpu.memory_space<vmem>>, vector<8x16x128xf32>
    %30 = vector.shape_cast %29 : vector<8x16x128xf32> to vector<128x128xf32>
    %31 = arith.truncf %30 : vector<128x128xf32> to vector<128x128xbf16>
    %c2_32 = arith.constant 2 : index
    %c0_33 = arith.constant 0 : index
    %c0_34 = arith.constant 0 : index
    %32 = vector.load %arg4[%c2_32, %c0_33, %c0_34] : memref<3x128x128xbf16, #tpu.memory_space<vmem>>, vector<1x128x128xbf16>
    %33 = vector.shape_cast %32 : vector<1x128x128xbf16> to vector<128x128xbf16>
    %cst_35 = arith.constant dense<0.000000e+00> : vector<128x128xf32>
    %34 = tpu.matmul %31, %33, %cst_35 {dimension_numbers = #tpu.dot_dimension_numbers<[1], [0], [0], [1], [0, 0, 1, 1], [], []>} : vector<128x128xbf16>, vector<128x128xbf16>, vector<128x128xf32> -> vector<128x128xf32>
    %35 = arith.addf %28, %34 : vector<128x128xf32>
    %c0_36 = arith.constant 0 : index
    %c0_37 = arith.constant 0 : index
    %36 = vector.load %arg5[%c0_36, %c0_37] : memref<1x128xf32, #tpu.memory_space<vmem>>, vector<1x128xf32>
    %37 = vector.broadcast %36 : vector<1x128xf32> to vector<128x128xf32>
    %38 = arith.addf %35, %37 : vector<128x128xf32>
    %c0_38 = arith.constant 0 : index
    %c0_39 = arith.constant 0 : index
    %39 = vector.load %arg12[%c0_38, %c0_39] : memref<128x128xf32, #tpu.memory_space<vmem>>, vector<128x128xf32>
    tpu.vector_store %arg12[%c0_38, %c0_39], %38 {strides = array<i32>} : memref<128x128xf32, #tpu.memory_space<vmem>>, vector<128x128xf32>,
    %c0_40 = arith.constant 0 : index
    %c0_41 = arith.constant 0 : index
    %40 = tpu.strided_load %arg12[%c0_40, %c0_41] {strides = array<i32: 2, 1>} : memref<128x128xf32, #tpu.memory_space<vmem>>, vector<64x128xf32>
    %c1_42 = arith.constant 1 : index
    %c0_43 = arith.constant 0 : index
    %41 = tpu.strided_load %arg12[%c1_42, %c0_43] {strides = array<i32: 2, 1>} : memref<128x128xf32, #tpu.memory_space<vmem>>, vector<64x128xf32>
    %42 = arith.maximumf %40, %41 : vector<64x128xf32>
    %cst_44 = arith.constant 0.000000e+00 : f32
    %43 = vector.broadcast %cst_44 : f32 to vector<8x1x128xf32>
    %c0_45 = arith.constant 0 : index
    %c0_46 = arith.constant 0 : index
    %c0_47 = arith.constant 0 : index
    %44 = vector.load %arg13[%c0_45, %c0_46, %c0_47] : memref<8x10x128xf32, #tpu.memory_space<vmem>>, vector<8x1x128xf32>
    tpu.vector_store %arg13[%c0_45, %c0_46, %c0_47], %43 {strides = array<i32>} : memref<8x10x128xf32, #tpu.memory_space<vmem>>, vector<8x1x128xf32>,
    %c0_48 = arith.constant 0 : index
    %c9 = arith.constant 9 : index
    %c0_49 = arith.constant 0 : index
    %45 = vector.load %arg13[%c0_48, %c9, %c0_49] : memref<8x10x128xf32, #tpu.memory_space<vmem>>, vector<8x1x128xf32>
    tpu.vector_store %arg13[%c0_48, %c9, %c0_49], %43 {strides = array<i32>} : memref<8x10x128xf32, #tpu.memory_space<vmem>>, vector<8x1x128xf32>,
    %46 = vector.shape_cast %42 : vector<64x128xf32> to vector<8x8x128xf32>
    %c0_50 = arith.constant 0 : index
    %c1_51 = arith.constant 1 : index
    %c0_52 = arith.constant 0 : index
    %47 = vector.load %arg13[%c0_50, %c1_51, %c0_52] : memref<8x10x128xf32, #tpu.memory_space<vmem>>, vector<8x8x128xf32>
    tpu.vector_store %arg13[%c0_50, %c1_51, %c0_52], %46 {strides = array<i32>} : memref<8x10x128xf32, #tpu.memory_space<vmem>>, vector<8x8x128xf32>,
    %c0_53 = arith.constant 0 : index
    %c0_54 = arith.constant 0 : index
    %c0_55 = arith.constant 0 : index
    %48 = vector.load %arg13[%c0_53, %c0_54, %c0_55] : memref<8x10x128xf32, #tpu.memory_space<vmem>>, vector<8x8x128xf32>
    %49 = vector.shape_cast %48 : vector<8x8x128xf32> to vector<64x128xf32>
    %50 = arith.truncf %49 : vector<64x128xf32> to vector<64x128xbf16>
    %c0_56 = arith.constant 0 : index
    %c0_57 = arith.constant 0 : index
    %c0_58 = arith.constant 0 : index
    %51 = vector.load %arg6[%c0_56, %c0_57, %c0_58] : memref<3x128x128xbf16, #tpu.memory_space<vmem>>, vector<1x128x128xbf16>
    %52 = vector.shape_cast %51 : vector<1x128x128xbf16> to vector<128x128xbf16>
    %cst_59 = arith.constant dense<0.000000e+00> : vector<64x128xf32>
    %53 = tpu.matmul %50, %52, %cst_59 {dimension_numbers = #tpu.dot_dimension_numbers<[1], [0], [0], [1], [0, 0, 1, 1], [], []>} : vector<64x128xbf16>, vector<128x128xbf16>, vector<64x128xf32> -> vector<64x128xf32>
    %c0_60 = arith.constant 0 : index
    %c1_61 = arith.constant 1 : index
    %c0_62 = arith.constant 0 : index
    %54 = vector.load %arg13[%c0_60, %c1_61, %c0_62] : memref<8x10x128xf32, #tpu.memory_space<vmem>>, vector<8x8x128xf32>
    %55 = vector.shape_cast %54 : vector<8x8x128xf32> to vector<64x128xf32>
    %56 = arith.truncf %55 : vector<64x128xf32> to vector<64x128xbf16>
    %c1_63 = arith.constant 1 : index
    %c0_64 = arith.constant 0 : index
    %c0_65 = arith.constant 0 : index
    %57 = vector.load %arg6[%c1_63, %c0_64, %c0_65] : memref<3x128x128xbf16, #tpu.memory_space<vmem>>, vector<1x128x128xbf16>
    %58 = vector.shape_cast %57 : vector<1x128x128xbf16> to vector<128x128xbf16>
    %cst_66 = arith.constant dense<0.000000e+00> : vector<64x128xf32>
    %59 = tpu.matmul %56, %58, %cst_66 {dimension_numbers = #tpu.dot_dimension_numbers<[1], [0], [0], [1], [0, 0, 1, 1], [], []>} : vector<64x128xbf16>, vector<128x128xbf16>, vector<64x128xf32> -> vector<64x128xf32>
    %60 = arith.addf %53, %59 : vector<64x128xf32>
    %c0_67 = arith.constant 0 : index
    %c2_68 = arith.constant 2 : index
    %c0_69 = arith.constant 0 : index
    %61 = vector.load %arg13[%c0_67, %c2_68, %c0_69] : memref<8x10x128xf32, #tpu.memory_space<vmem>>, vector<8x8x128xf32>
    %62 = vector.shape_cast %61 : vector<8x8x128xf32> to vector<64x128xf32>
    %63 = arith.truncf %62 : vector<64x128xf32> to vector<64x128xbf16>
    %c2_70 = arith.constant 2 : index
    %c0_71 = arith.constant 0 : index
    %c0_72 = arith.constant 0 : index
    %64 = vector.load %arg6[%c2_70, %c0_71, %c0_72] : memref<3x128x128xbf16, #tpu.memory_space<vmem>>, vector<1x128x128xbf16>
    %65 = vector.shape_cast %64 : vector<1x128x128xbf16> to vector<128x128xbf16>
    %cst_73 = arith.constant dense<0.000000e+00> : vector<64x128xf32>
    %66 = tpu.matmul %63, %65, %cst_73 {dimension_numbers = #tpu.dot_dimension_numbers<[1], [0], [0], [1], [0, 0, 1, 1], [], []>} : vector<64x128xbf16>, vector<128x128xbf16>, vector<64x128xf32> -> vector<64x128xf32>
    %67 = arith.addf %60, %66 : vector<64x128xf32>
    %c0_74 = arith.constant 0 : index
    %c0_75 = arith.constant 0 : index
    %68 = vector.load %arg7[%c0_74, %c0_75] : memref<1x128xf32, #tpu.memory_space<vmem>>, vector<1x128xf32>
    %69 = vector.broadcast %68 : vector<1x128xf32> to vector<64x128xf32>
    %70 = arith.addf %67, %69 : vector<64x128xf32>
    %c0_76 = arith.constant 0 : index
    %c0_77 = arith.constant 0 : index
    %71 = vector.load %arg14[%c0_76, %c0_77] : memref<64x128xf32, #tpu.memory_space<vmem>>, vector<64x128xf32>
    tpu.vector_store %arg14[%c0_76, %c0_77], %70 {strides = array<i32>} : memref<64x128xf32, #tpu.memory_space<vmem>>, vector<64x128xf32>,
    %c0_78 = arith.constant 0 : index
    %c0_79 = arith.constant 0 : index
    %72 = tpu.strided_load %arg14[%c0_78, %c0_79] {strides = array<i32: 8, 1>} : memref<64x128xf32, #tpu.memory_space<vmem>>, vector<8x128xf32>
    %c0_80 = arith.constant 0 : index
    %c0_81 = arith.constant 0 : index
    %73 = vector.load %arg15[%c0_80, %c0_81] : memref<8x1024xf32, #tpu.memory_space<vmem>>, vector<8x128xf32>
    tpu.vector_store %arg15[%c0_80, %c0_81], %72 {strides = array<i32>} : memref<8x1024xf32, #tpu.memory_space<vmem>>, vector<8x128xf32>,
    %c1_82 = arith.constant 1 : index
    %c0_83 = arith.constant 0 : index
    %74 = tpu.strided_load %arg14[%c1_82, %c0_83] {strides = array<i32: 8, 1>} : memref<64x128xf32, #tpu.memory_space<vmem>>, vector<8x128xf32>
    %c0_84 = arith.constant 0 : index
    %c128 = arith.constant 128 : index
    %75 = vector.load %arg15[%c0_84, %c128] : memref<8x1024xf32, #tpu.memory_space<vmem>>, vector<8x128xf32>
    tpu.vector_store %arg15[%c0_84, %c128], %74 {strides = array<i32>} : memref<8x1024xf32, #tpu.memory_space<vmem>>, vector<8x128xf32>,
    %c2_85 = arith.constant 2 : index
    %c0_86 = arith.constant 0 : index
    %76 = tpu.strided_load %arg14[%c2_85, %c0_86] {strides = array<i32: 8, 1>} : memref<64x128xf32, #tpu.memory_space<vmem>>, vector<8x128xf32>
    %c0_87 = arith.constant 0 : index
    %c256 = arith.constant 256 : index
    %77 = vector.load %arg15[%c0_87, %c256] : memref<8x1024xf32, #tpu.memory_space<vmem>>, vector<8x128xf32>
    tpu.vector_store %arg15[%c0_87, %c256], %76 {strides = array<i32>} : memref<8x1024xf32, #tpu.memory_space<vmem>>, vector<8x128xf32>,
    %c3 = arith.constant 3 : index
    %c0_88 = arith.constant 0 : index
    %78 = tpu.strided_load %arg14[%c3, %c0_88] {strides = array<i32: 8, 1>} : memref<64x128xf32, #tpu.memory_space<vmem>>, vector<8x128xf32>
    %c0_89 = arith.constant 0 : index
    %c384 = arith.constant 384 : index
    %79 = vector.load %arg15[%c0_89, %c384] : memref<8x1024xf32, #tpu.memory_space<vmem>>, vector<8x128xf32>
    tpu.vector_store %arg15[%c0_89, %c384], %78 {strides = array<i32>} : memref<8x1024xf32, #tpu.memory_space<vmem>>, vector<8x128xf32>,
    %c4 = arith.constant 4 : index
    %c0_90 = arith.constant 0 : index
    %80 = tpu.strided_load %arg14[%c4, %c0_90] {strides = array<i32: 8, 1>} : memref<64x128xf32, #tpu.memory_space<vmem>>, vector<8x128xf32>
    %c0_91 = arith.constant 0 : index
    %c512 = arith.constant 512 : index
    %81 = vector.load %arg15[%c0_91, %c512] : memref<8x1024xf32, #tpu.memory_space<vmem>>, vector<8x128xf32>
    tpu.vector_store %arg15[%c0_91, %c512], %80 {strides = array<i32>} : memref<8x1024xf32, #tpu.memory_space<vmem>>, vector<8x128xf32>,
    %c5 = arith.constant 5 : index
    %c0_92 = arith.constant 0 : index
    %82 = tpu.strided_load %arg14[%c5, %c0_92] {strides = array<i32: 8, 1>} : memref<64x128xf32, #tpu.memory_space<vmem>>, vector<8x128xf32>
    %c0_93 = arith.constant 0 : index
    %c640 = arith.constant 640 : index
    %83 = vector.load %arg15[%c0_93, %c640] : memref<8x1024xf32, #tpu.memory_space<vmem>>, vector<8x128xf32>
    tpu.vector_store %arg15[%c0_93, %c640], %82 {strides = array<i32>} : memref<8x1024xf32, #tpu.memory_space<vmem>>, vector<8x128xf32>,
    %c6 = arith.constant 6 : index
    %c0_94 = arith.constant 0 : index
    %84 = tpu.strided_load %arg14[%c6, %c0_94] {strides = array<i32: 8, 1>} : memref<64x128xf32, #tpu.memory_space<vmem>>, vector<8x128xf32>
    %c0_95 = arith.constant 0 : index
    %c768 = arith.constant 768 : index
    %85 = vector.load %arg15[%c0_95, %c768] : memref<8x1024xf32, #tpu.memory_space<vmem>>, vector<8x128xf32>
    tpu.vector_store %arg15[%c0_95, %c768], %84 {strides = array<i32>} : memref<8x1024xf32, #tpu.memory_space<vmem>>, vector<8x128xf32>,
    %c7 = arith.constant 7 : index
    %c0_96 = arith.constant 0 : index
    %86 = tpu.strided_load %arg14[%c7, %c0_96] {strides = array<i32: 8, 1>} : memref<64x128xf32, #tpu.memory_space<vmem>>, vector<8x128xf32>
    %c0_97 = arith.constant 0 : index
    %c896 = arith.constant 896 : index
    %87 = vector.load %arg15[%c0_97, %c896] : memref<8x1024xf32, #tpu.memory_space<vmem>>, vector<8x128xf32>
    tpu.vector_store %arg15[%c0_97, %c896], %86 {strides = array<i32>} : memref<8x1024xf32, #tpu.memory_space<vmem>>, vector<8x128xf32>,
    %c0_98 = arith.constant 0 : index
    %c0_99 = arith.constant 0 : index
    %88 = vector.load %arg15[%c0_98, %c0_99] : memref<8x1024xf32, #tpu.memory_space<vmem>>, vector<8x1024xf32>
    %89 = arith.truncf %88 : vector<8x1024xf32> to vector<8x1024xbf16>
    %c0_100 = arith.constant 0 : index
    %c0_101 = arith.constant 0 : index
    %90 = vector.load %arg8[%c0_100, %c0_101] : memref<1024x128xbf16, #tpu.memory_space<vmem>>, vector<1024x128xbf16>
    %cst_102 = arith.constant dense<0.000000e+00> : vector<8x128xf32>
    %91 = tpu.matmul %89, %90, %cst_102 {dimension_numbers = #tpu.dot_dimension_numbers<[1], [0], [0], [1], [0, 0, 1, 1], [], []>} : vector<8x1024xbf16>, vector<1024x128xbf16>, vector<8x128xf32> -> vector<8x128xf32>
    %c0_103 = arith.constant 0 : index
    %c0_104 = arith.constant 0 : index
    %92 = vector.load %arg9[%c0_103, %c0_104] : memref<1x128xf32, #tpu.memory_space<vmem>>, vector<1x128xf32>
    %93 = vector.broadcast %92 : vector<1x128xf32> to vector<8x128xf32>
    %94 = arith.addf %91, %93 : vector<8x128xf32>
    %c0_105 = arith.constant 0 : index
    %c0_106 = arith.constant 0 : index
    %95 = vector.load %arg10[%c0_105, %c0_106] : memref<8x128xf32, #tpu.memory_space<vmem>>, vector<8x128xf32>
    tpu.vector_store %arg10[%c0_105, %c0_106], %94 {strides = array<i32>} : memref<8x128xf32, #tpu.memory_space<vmem>>, vector<8x128xf32>,
    return
  }
  func.func @transform_0(%arg0: i32) -> (i32, i32, i32) {
    %c0_i32 = arith.constant 0 : i32
    %c0_i32_0 = arith.constant 0 : i32
    %c0_i32_1 = arith.constant 0 : i32
    return %arg0, %c0_i32, %c0_i32_0 : i32, i32, i32
  }
  func.func @transform_1(%arg0: i32) -> (i32, i32, i32) {
    %c0_i32 = arith.constant 0 : i32
    %c0_i32_0 = arith.constant 0 : i32
    %c0_i32_1 = arith.constant 0 : i32
    %c0_i32_2 = arith.constant 0 : i32
    return %c0_i32, %c0_i32_0, %c0_i32_1 : i32, i32, i32
  }
  func.func @transform_2(%arg0: i32) -> (i32, i32, i32) {
    %c0_i32 = arith.constant 0 : i32
    %c0_i32_0 = arith.constant 0 : i32
    %c0_i32_1 = arith.constant 0 : i32
    %c0_i32_2 = arith.constant 0 : i32
    return %c0_i32, %c0_i32_0, %c0_i32_1 : i32, i32, i32
  }
  func.func @transform_3(%arg0: i32) -> (i32, i32, i32) {
    %c0_i32 = arith.constant 0 : i32
    %c0_i32_0 = arith.constant 0 : i32
    %c0_i32_1 = arith.constant 0 : i32
    %c0_i32_2 = arith.constant 0 : i32
    return %c0_i32, %c0_i32_0, %c0_i32_1 : i32, i32, i32
  }
  func.func @transform_4(%arg0: i32) -> (i32, i32) {
    %c0_i32 = arith.constant 0 : i32
    %c0_i32_0 = arith.constant 0 : i32
    %c0_i32_1 = arith.constant 0 : i32
    return %c0_i32, %c0_i32_0 : i32, i32
  }
  func.func @transform_5(%arg0: i32) -> (i32, i32, i32) {
    %c0_i32 = arith.constant 0 : i32
    %c0_i32_0 = arith.constant 0 : i32
    %c0_i32_1 = arith.constant 0 : i32
    %c0_i32_2 = arith.constant 0 : i32
    return %c0_i32, %c0_i32_0, %c0_i32_1 : i32, i32, i32
  }
  func.func @transform_6(%arg0: i32) -> (i32, i32) {
    %c0_i32 = arith.constant 0 : i32
    %c0_i32_0 = arith.constant 0 : i32
    %c0_i32_1 = arith.constant 0 : i32
    return %c0_i32, %c0_i32_0 : i32, i32
  }
  func.func @transform_7(%arg0: i32) -> (i32, i32) {
    %c0_i32 = arith.constant 0 : i32
    %c0_i32_0 = arith.constant 0 : i32
    %c0_i32_1 = arith.constant 0 : i32
    return %c0_i32, %c0_i32_0 : i32, i32
  }
  func.func @transform_8(%arg0: i32) -> (i32, i32) {
    %c0_i32 = arith.constant 0 : i32
    %c0_i32_0 = arith.constant 0 : i32
    %c0_i32_1 = arith.constant 0 : i32
    return %c0_i32, %c0_i32_0 : i32, i32
  }
  func.func @transform_9(%arg0: i32) -> (i32, i32) {
    %c0_i32 = arith.constant 0 : i32
    %c0_i32_0 = arith.constant 0 : i32
    return %arg0, %c0_i32 : i32, i32
  }
}

</mosaic_0001>

<bundles_post_ra>
// kernel: tpu_custom_call.1
= control target key start
LH: loop header
LB: loop body
LE: loop exit
PB: predicated region body
PF: predicated region fallthrough
CT: control target
= control target key end

     0   :  { %14 = vsyncpa [#allocation8], 0  ;;  %s3111_s0 = inlined_call_operand.vmem [shape: f32[8,16,1], index: 0, kind: input, shape index: {}]   ;;  %s3112_s1 = inlined_call_operand.vmem [shape: f32[1,1,128], index: 1, kind: input, shape index: {}]   ;;  %s3113_s2 = inlined_call_operand.vmem [shape: f32[1,1,128], index: 2, kind: input, shape index: {}]   ;;  %s3114_s3 = inlined_call_operand.hbm [shape: bf16[3,128,128], index: 3, kind: input, shape index: {}]   ;;  %s3115_s4 = inlined_call_operand.vmem [shape: f32[1,128], index: 4, kind: input, shape index: {}]   ;;  %s3116_s5 = inlined_call_operand.hbm [shape: bf16[3,128,128], index: 5, kind: input, shape index: {}]   ;;  %s3117_s6 = inlined_call_operand.vmem [shape: f32[1,128], index: 6, kind: input, shape index: {}]   ;;  %s3118_s7 = inlined_call_operand.hbm [shape: bf16[1024,128], index: 7, kind: input, shape index: {}]   ;;  %s3119_s8 = inlined_call_operand.vmem [shape: f32[1,128], index: 8, kind: input, shape index: {}]   ;;  %s3120_s9 = inlined_call_operand.hbm [shape: f32[8,128], index: 9, kind: output, shape index: {}]  }
   0x1   :  { %15 = vsyncpa [#allocation11], 0 }
   0x2   :  { %16 = vsyncpa [#allocation9], 0  ;;  %s2868_s30 = smov [#allocation10]   ;;  %s2869_s11 = smov [#allocation7]  }
   0x3   :  { %s42_s10 = sshll.u32 %s2868_s30, 4  ;;  %s28_s12 = sshll.u32 %s2869_s11, 4  ;;  %s43_s10 = int_to_ptr.vmem [resolvable:$true] %s42_s10  ;;  %s2926_s12 = int_to_ptr.vmem [resolvable:$true] %s28_s12 }
   0x4   :  { %s2774_s15 = scalar_lea.hbm %s3116_s5, 3072 }
   0x5   :  { %p2775_p0 = scmp.ne.s32.totalorder %s3116_s5, %s2774_s15  ;;  %p2778_p1 = scmp.lt.u32.totalorder %s2774_s15, %s3116_s5 }
   0x7   :  { %p2780_p2 = pnand %p2778_p1, %p2775_p0 }
   0x9   :  { %2783 = shalt.err (!%p2780_p2)
}
   0xa   :  { %s2784_s20 = scalar_lea.vmem %s43_s10, 3072  ;;  %p2789_p4 = scmp.lt.s32.totalorder %s43_s10, %s43_s10 }
   0xb   :  { %p2785_p3 = scmp.ne.s32.totalorder %s43_s10, %s2784_s20  ;;  %p2790_p5 = scmp.lt.s32.totalorder %s2784_s20, %s2784_s20 }
   0xd   :  { %p2791_p6 = por %p2790_p5, %p2789_p4 }
   0xf   :  { %p2792_p7 = pnand %p2791_p6, %p2785_p3 }
  0x11   :  { %2795 = shalt.err (!%p2792_p7)
}
  0x12   :  { %s2870_s21 = smov 64   ;;  %s2871_s22 = smov 4  }
  0x13   :  { %48 = dma.hbm_to_vmem [thread:$0]  %s3116_s5, 3072, %s43_s10, [#allocation11], %s2870_s21, %s2870_s21, %s2871_s22  }
  0x14   :  { %s2796_s27 = scalar_lea.hbm %s3114_s3, 3072 }
  0x15   :  { %p2797_p8 = scmp.ne.s32.totalorder %s3114_s3, %s2796_s27  ;;  %p2800_p9 = scmp.lt.u32.totalorder %s2796_s27, %s3114_s3 }
  0x17   :  { %p2802_p10 = pnand %p2800_p9, %p2797_p8 }
  0x19   :  { %2805 = shalt.err (!%p2802_p10)
}
  0x1a   :  { %s2806_s13 = scalar_lea.vmem %s2926_s12, 3072  ;;  %p2811_p12 = scmp.lt.s32.totalorder %s2926_s12, %s2926_s12 }
  0x1b   :  { %p2807_p11 = scmp.ne.s32.totalorder %s2926_s12, %s2806_s13  ;;  %p2812_p13 = scmp.lt.s32.totalorder %s2806_s13, %s2806_s13 }
  0x1d   :  { %p2813_p0 = por %p2812_p13, %p2811_p12 }
  0x1f   :  { %p2814_p1 = pnand %p2813_p0, %p2807_p11 }
  0x21   :  { %2817 = shalt.err (!%p2814_p1)
}
  0x22   :  { %34 = dma.hbm_to_vmem [thread:$0]  %s3114_s3, 3072, %s2926_s12, [#allocation8], %s2870_s21, %s2870_s21, %s2871_s22  }
  0x23   :  { %s2872_s14 = smov [#allocation12]   ;;  %s2818_s18 = scalar_lea.hbm %s3118_s7, 8192 }
  0x24   :  { %s56_s15 = sshll.u32 %s2872_s14, 4  ;;  %p2819_p2 = scmp.ne.s32.totalorder %s3118_s7, %s2818_s18  ;;  %s57_s15 = int_to_ptr.vmem [resolvable:$true] %s56_s15 }
  0x25   :  { %p2822_p3 = scmp.lt.u32.totalorder %s2818_s18, %s3118_s7 }
  0x27   :  { %p2824_p4 = pnand %p2822_p3, %p2819_p2 }
  0x29   :  { %2827 = shalt.err (!%p2824_p4)
}
  0x2a   :  { %s2828_s25 = scalar_lea.vmem %s57_s15, 8192  ;;  %p2833_p6 = scmp.lt.s32.totalorder %s57_s15, %s57_s15 }
  0x2b   :  { %p2829_p5 = scmp.ne.s32.totalorder %s57_s15, %s2828_s25  ;;  %p2834_p7 = scmp.lt.s32.totalorder %s2828_s25, %s2828_s25 }
  0x2d   :  { %p2835_p8 = por %p2834_p7, %p2833_p6 }
  0x2f   :  { %p2836_p9 = pnand %p2835_p8, %p2829_p5 }
  0x31   :  { %2839 = shalt.err (!%p2836_p9)
}
  0x32   :  { %62 = dma.hbm_to_vmem [thread:$0]  %s3118_s7, 8192, %s57_s15, [#allocation11], %s2870_s21, %s2870_s21, %s2871_s22  }
  0x33   :  { %2862 = dma.done.wait [#allocation8], 3072  }
  0x34   :  { %2863 = vsyncadd [#allocation8], 4294964224 }
  0x35   :  { %2864 = dma.done.wait [#allocation11], 11264  }
  0x36   :  { %2865 = vsyncadd [#allocation11], 4294956032  ;;  %v2873_v0 = vmov 0   ;;  %v77_v1 = vld [vmem:[%s3111_s0 + $0x10] sm:$0xff]  ;;  %v75_v2 = vld [vmem:[%s3111_s0] sm:$0xff]  ;;  %v2874_v9 = vmov 0.0  }
  0x37   :  { %2661 = vset.pattern.permute.xlu1 %v2873_v0  ;;  %2660 = vset.pattern.permute.xlu0 %v2873_v0  ;;  %v78_v3 = vld [vmem:[%s3111_s0 + $0x18] sm:$0xff]  ;;  %v76_v4 = vld [vmem:[%s3111_s0 + $0x8] sm:$0xff]  ;;  %v79_v6 = vld [vmem:[%s3111_s0 + $0x20] sm:$0xff]  ;;  %233 = vst [vmem:[#allocation2] sm:$0x1] %v2874_v9 }
  0x38   :  { %105 = vperm.xlu1 %2661, %v77_v1   ;;  %95 = vperm.xlu0 %2660, %v75_v2   ;;  %v80_v5 = vld [vmem:[%s3111_s0 + $0x28] sm:$0xff]  ;;  %v2662_v7 = vld [vmem:[#allocation7 + $0x40] sm:$0xff]   ;;  %234 = vst [vmem:[#allocation2 + $0x18] sm:$0x1] %v2874_v9  ;;  %235 = vst [vmem:[#allocation2 + $0x30] sm:$0x1] %v2874_v9 }
  0x39   :  { %v2663_v8 = vld [vmem:[#allocation7 + $0x48] sm:$0xff]   ;;  %236 = vst [vmem:[#allocation2 + $0x48] sm:$0x1] %v2874_v9  ;;  %237 = vst [vmem:[#allocation2 + $0x60] sm:$0x1] %v2874_v9  ;;  %2436 = vmatprep.subr.bf16.mxu0 %v2662_v7  ;;  %v82_v10 = vld [vmem:[%s3111_s0 + $0x38] sm:$0xff] }
  0x3a   :  { %238 = vst [vmem:[#allocation2 + $0x78] sm:$0x1] %v2874_v9  ;;  %239 = vst [vmem:[#allocation2 + $0x90] sm:$0x1] %v2874_v9  ;;  %v81_v11 = vld [vmem:[%s3111_s0 + $0x30] sm:$0xff]  ;;  %2437 = vmatpush3.bf16.msra.mxu0 %v2662_v7  ;;  %v84_v13 = vld [vmem:[%s3111_s0 + $0x48] sm:$0xff] }
  0x3b   :  { %240 = vst [vmem:[#allocation2 + $0xa8] sm:$0x1] %v2874_v9  ;;  %241 = vst [vmem:[#allocation2 + $0x11] sm:$0x1] %v2874_v9  ;;  %2438 = vmatprep.subr.bf16.mxu0 %v2663_v8  ;;  %v2664_v12 = vld [vmem:[#allocation7 + $0x50] sm:$0xff]   ;;  %v83_v14 = vld [vmem:[%s3111_s0 + $0x40] sm:$0xff] }
  0x3c   :  { %110 = vperm.xlu1 %2661, %v78_v3   ;;  %100 = vperm.xlu0 %2660, %v76_v4   ;;  %242 = vst [vmem:[#allocation2 + $0x29] sm:$0x1] %v2874_v9  ;;  %243 = vst [vmem:[#allocation2 + $0x41] sm:$0x1] %v2874_v9  ;;  %v2665_v15 = vld [vmem:[#allocation7 + $0x58] sm:$0xff]   ;;  %v85_v17 = vld [vmem:[%s3111_s0 + $0x50] sm:$0xff] }
  0x3d   :  { %244 = vst [vmem:[#allocation2 + $0x59] sm:$0x1] %v2874_v9  ;;  %245 = vst [vmem:[#allocation2 + $0x71] sm:$0x1] %v2874_v9  ;;  %v86_v16 = vld [vmem:[%s3111_s0 + $0x58] sm:$0xff]  ;;  %v2666_v18 = vld [vmem:[#allocation7 + $0x60] sm:$0xff]  }
  0x3e   :  { %246 = vst [vmem:[#allocation2 + $0x89] sm:$0x1] %v2874_v9  ;;  %247 = vst [vmem:[#allocation2 + $0xa1] sm:$0x1] %v2874_v9  ;;  %2439 = vmatpush3.bf16.msra.mxu0 %v2663_v8  ;;  %v88_v19 = vld [vmem:[%s3111_s0 + $0x68] sm:$0xff]  ;;  %v87_v20 = vld [vmem:[%s3111_s0 + $0x60] sm:$0xff] }
  0x3f   :  { %248 = vst [vmem:[#allocation2 + $0xb9] sm:$0x1] %v2874_v9  ;;  %916 = vst [vmem:[#allocation4] sm:$0x1] %v2874_v9  ;;  %2440 = vmatprep.subr.bf16.mxu0 %v2664_v12  ;;  %v2667_v21 = vld [vmem:[#allocation7 + $0x68] sm:$0xff]   ;;  %v90_v22 = vld [vmem:[%s3111_s0 + $0x78] sm:$0xff] }
  0x40   :  { %917 = vst [vmem:[#allocation4 + $0x10] sm:$0x1] %v2874_v9  ;;  %918 = vst [vmem:[#allocation4 + $0x20] sm:$0x1] %v2874_v9  ;;  %120 = vperm.xlu1 %2661, %v80_v5   ;;  %115 = vperm.xlu0 %2660, %v79_v6   ;;  %v89_v23 = vld [vmem:[%s3111_s0 + $0x70] sm:$0xff]  ;;  %v2669_v25 = vld [vmem:[#allocation7 + $0x78] sm:$0xff]  }
  0x41   :  { %919 = vst [vmem:[#allocation4 + $0x30] sm:$0x1] %v2874_v9  ;;  %920 = vst [vmem:[#allocation4 + $0x40] sm:$0x1] %v2874_v9  ;;  %v2668_v24 = vld [vmem:[#allocation7 + $0x70] sm:$0xff]   ;;  %v2670_v26 = vld [vmem:[#allocation7] sm:$0xff]  }
  0x42   :  { %921 = vst [vmem:[#allocation4 + $0x50] sm:$0x1] %v2874_v9  ;;  %922 = vst [vmem:[#allocation4 + $0x60] sm:$0x1] %v2874_v9  ;;  %2441 = vmatpush3.bf16.msra.mxu0 %v2664_v12  ;;  %v3029_v27 = vld [vmem:[%s3112_s1] ss:$0 sm:$0xff] }
  0x43   :  { %923 = vst [vmem:[#allocation4 + $0x70] sm:$0x1] %v2874_v9  ;;  %924 = vst [vmem:[#allocation4 + $0x9] sm:$0x1] %v2874_v9  ;;  %2442 = vmatprep.subr.bf16.mxu0 %v2665_v15  ;;  %v3034_v28 = vld [vmem:[%s3113_s2] ss:$0 sm:$0xff] }
  0x44   :  { %925 = vst [vmem:[#allocation4 + $0x19] sm:$0x1] %v2874_v9  ;;  %926 = vst [vmem:[#allocation4 + $0x29] sm:$0x1] %v2874_v9  ;;  %130 = vperm.xlu1 %2661, %v82_v10   ;;  %125 = vperm.xlu0 %2660, %v81_v11   ;;  %v2671_v55 = vld [vmem:[#allocation7 + $0x8] sm:$0xff]   ;;  %v2672_v1 = vld [vmem:[#allocation7 + $0x10] sm:$0xff]  }
  0x45   :  { %927 = vst [vmem:[#allocation4 + $0x39] sm:$0x1] %v2874_v9  ;;  %928 = vst [vmem:[#allocation4 + $0x49] sm:$0x1] %v2874_v9  ;;  %v2673_v11 = vld [vmem:[#allocation7 + $0x18] sm:$0xff]  }
  0x46   :  { %929 = vst [vmem:[#allocation4 + $0x59] sm:$0x1] %v2874_v9  ;;  %930 = vst [vmem:[#allocation4 + $0x69] sm:$0x1] %v2874_v9  ;;  %2443 = vmatpush3.bf16.msra.mxu0 %v2665_v15 }
  0x47   :  { %931 = vst [vmem:[#allocation4 + $0x79] sm:$0x1] %v2874_v9  ;;  %2444 = vmatprep.subr.bf16.mxu0 %v2666_v18 }
  0x48   :  { %140 = vperm.xlu1 %2661, %v84_v13   ;;  %135 = vperm.xlu0 %2660, %v83_v14  }
  0x4a   :  { %2445 = vmatpush3.bf16.msra.mxu0 %v2666_v18 }
  0x4b   :  { %2446 = vmatprep.subr.bf16.mxu0 %v2667_v21 }
  0x4c   :  { %150 = vperm.xlu1 %2661, %v86_v16   ;;  %145 = vperm.xlu0 %2660, %v85_v17  }
  0x4e   :  { %2447 = vmatpush3.bf16.msra.mxu0 %v2667_v21  ;;  %v2674_v21 = vld [vmem:[#allocation7 + $0x20] sm:$0xff]  }
  0x4f   :  { %2448 = vmatprep.subr.bf16.mxu0 %v2668_v24 }
  0x50   :  { %160 = vperm.xlu1 %2661, %v88_v19   ;;  %155 = vperm.xlu0 %2660, %v87_v20  }
  0x52   :  { %2449 = vmatpush3.bf16.msra.mxu0 %v2668_v24 }
  0x53   :  { %2450 = vmatprep.subr.bf16.mxu0 %v2669_v25 }
  0x54   :  { %170 = vperm.xlu1 %2661, %v90_v22   ;;  %165 = vperm.xlu0 %2660, %v89_v23  }
  0x56   :  { %2451 = vmatpush3.bf16.msra.mxu0 %v2669_v25 }
  0x57   :  { %2468 = vmatprep.subr.bf16.mxu0 %v2670_v26 }
  0xb7   :  { %v106_v29 = vpop.permute.xlu1 %105  ;;  %v96_v30 = vpop.permute.xlu0 %95 }
  0xb8   :  { %v181_v31 = vmul.f32 %v3029_v27, %v106_v29  ;;  %v179_v32 = vmul.f32 %v3029_v27, %v96_v30 }
  0xba   :  { %v203_v33 = vadd.f32 %v3034_v28, %v181_v31  ;;  %v201_v34 = vadd.f32 %v3034_v28, %v179_v32 }
  0xbb   :  { %v111_v35 = vpop.permute.xlu1 %110  ;;  %v101_v36 = vpop.permute.xlu0 %100 }
  0xbc   :  { %v219_v37 = vmax.f32 %v203_v33, 0.0  ;;  %v217_v38 = vmax.f32 %v201_v34, 0.0  ;;  %v182_v39 = vmul.f32 %v3029_v27, %v111_v35  ;;  %v180_v40 = vmul.f32 %v3029_v27, %v101_v36  ;;  %v2675_v33 = vld [vmem:[#allocation7 + $0x28] sm:$0xff]  }
  0xbe   :  { %251 = vst [vmem:[#allocation2 + $0x19] sm:$0xff] %v219_v37  ;;  %249 = vst [vmem:[#allocation2 + $0x1] sm:$0xff] %v217_v38  ;;  %v204_v41 = vadd.f32 %v3034_v28, %v182_v39  ;;  %v202_v42 = vadd.f32 %v3034_v28, %v180_v40 }
  0xbf   :  { %v121_v43 = vpop.permute.xlu1 %120  ;;  %v116_v44 = vpop.permute.xlu0 %115 }
  0xc0   :  { %v220_v45 = vmax.f32 %v204_v41, 0.0  ;;  %v218_v46 = vmax.f32 %v202_v42, 0.0  ;;  %v184_v47 = vmul.f32 %v3029_v27, %v121_v43  ;;  %v183_v48 = vmul.f32 %v3029_v27, %v116_v44  ;;  %v2676_v41 = vld [vmem:[#allocation7 + $0x30] sm:$0xff]  }
  0xc2   :  { %252 = vst [vmem:[#allocation2 + $0x21] sm:$0xff] %v220_v45  ;;  %250 = vst [vmem:[#allocation2 + $0x9] sm:$0xff] %v218_v46  ;;  %v206_v49 = vadd.f32 %v3034_v28, %v184_v47  ;;  %v205_v50 = vadd.f32 %v3034_v28, %v183_v48  ;;  %v321_v51 = vpack.c.bf16 %v218_v46, %v217_v38  ;;  %v2677_v46 = vld [vmem:[#allocation7 + $0x38] sm:$0xff]  }
  0xc3   :  { %v322_v52 = vpack.c.bf16 %v220_v45, %v219_v37  ;;  %v131_v53 = vpop.permute.xlu1 %130  ;;  %v126_v54 = vpop.permute.xlu0 %125 }
  0xc4   :  { %v222_v56 = vmax.f32 %v206_v49, 0.0  ;;  %v221_v57 = vmax.f32 %v205_v50, 0.0  ;;  %v186_v58 = vmul.f32 %v3029_v27, %v131_v53  ;;  %v185_v59 = vmul.f32 %v3029_v27, %v126_v54  ;;  %2452 = vmatprep.mubr.bf16.mxu0 %v321_v51  ;;  %v2679_v53 = vld [vmem:[#allocation7 + $0x88] sm:$0xff]  }
  0xc5   :  { %2453 = vmatmul.mubr.bf16.vlgmr.msra.gmra.mrb[0].mxu0 %v322_v52  ;;  %v267_v51 = vld [vmem:[#allocation2 + $0x18] sm:$0xff] }
  0xc6   :  { %254 = vst [vmem:[#allocation2 + $0x39] sm:$0xff] %v222_v56  ;;  %253 = vst [vmem:[#allocation2 + $0x31] sm:$0xff] %v221_v57  ;;  %v208_v60 = vadd.f32 %v3034_v28, %v186_v58  ;;  %v207_v61 = vadd.f32 %v3034_v28, %v185_v59  ;;  %2469 = vmatpush3.bf16.msra.mxu0 %v2670_v26  ;;  %v323_v62 = vpack.c.bf16 %v222_v56, %v221_v57 }
  0xc7   :  { %v141_v63 = vpop.permute.xlu1 %140  ;;  %v136_v0 = vpop.permute.xlu0 %135  ;;  %2470 = vmatprep.subr.bf16.mxu0 %v2671_v55 }
  0xc8   :  { %v224_v2 = vmax.f32 %v208_v60, 0.0  ;;  %v223_v3 = vmax.f32 %v207_v61, 0.0  ;;  %v188_v4 = vmul.f32 %v3029_v27, %v141_v63  ;;  %v187_v5 = vmul.f32 %v3029_v27, %v136_v0  ;;  %2456 = vmatprep.mubr.bf16.mxu0 %v323_v62  ;;  %v2681_v61 = vld [vmem:[#allocation7 + $0x98] sm:$0xff]   ;;  %v2682_v63 = vld [vmem:[#allocation7 + $0xa0] sm:$0xff]  }
  0xc9   :  { %v266_v44 = vld [vmem:[#allocation2 + $0x8] sm:$0xff]  ;;  %v268_v48 = vld [vmem:[#allocation2 + $0x20] sm:$0xff] }
  0xca   :  { %256 = vst [vmem:[#allocation2 + $0x51] sm:$0xff] %v224_v2  ;;  %255 = vst [vmem:[#allocation2 + $0x49] sm:$0xff] %v223_v3  ;;  %v210_v6 = vadd.f32 %v3034_v28, %v188_v4  ;;  %v209_v7 = vadd.f32 %v3034_v28, %v187_v5  ;;  %2471 = vmatpush3.bf16.msra.mxu0 %v2671_v55  ;;  %v324_v8 = vpack.c.bf16 %v224_v2, %v223_v3  ;;  %v2680_v55 = vld [vmem:[#allocation7 + $0x90] sm:$0xff]   ;;  %v2683_v5 = vld [vmem:[#allocation7 + $0xa8] sm:$0xff]  }
  0xcb   :  { %v151_v9 = vpop.permute.xlu1 %150  ;;  %v146_v10 = vpop.permute.xlu0 %145  ;;  %2472 = vmatprep.subr.bf16.mxu0 %v2672_v1  ;;  %v282_v52 = vpack.c.bf16 %v268_v48, %v267_v51  ;;  %v2716_v48 = vld [vmem:[#allocation12 + $0x8] sm:$0xff]  }
  0xcc   :  { %v226_v12 = vmax.f32 %v210_v6, 0.0  ;;  %v225_v13 = vmax.f32 %v209_v7, 0.0  ;;  %v190_v14 = vmul.f32 %v3029_v27, %v151_v9  ;;  %v189_v15 = vmul.f32 %v3029_v27, %v146_v10  ;;  %v2684_v7 = vld [vmem:[#allocation7 + $0xb0] sm:$0xff]   ;;  %v636_v10 = vld [vmem:[#allocation2 + $0x2] sm:$0xff] }
  0xcd   :  { %2457 = vmatmul.mubr.bf16.gmra.mrb[4].mxu0 %v324_v8  ;;  %v269_v49 = vld [vmem:[#allocation2 + $0x30] sm:$0xff]  ;;  %v270_v50 = vld [vmem:[#allocation2 + $0x38] sm:$0xff] }
  0xce   :  { %258 = vst [vmem:[#allocation2 + $0x69] sm:$0xff] %v226_v12  ;;  %257 = vst [vmem:[#allocation2 + $0x61] sm:$0xff] %v225_v13  ;;  %v212_v16 = vadd.f32 %v3034_v28, %v190_v14  ;;  %v211_v17 = vadd.f32 %v3034_v28, %v189_v15  ;;  %2473 = vmatpush3.bf16.msra.mxu0 %v2672_v1  ;;  %v325_v18 = vpack.c.bf16 %v226_v12, %v225_v13  ;;  %v2685_v13 = vld [vmem:[#allocation7 + $0xb8] sm:$0xff]  }
  0xcf   :  { %v161_v19 = vpop.permute.xlu1 %160  ;;  %v156_v20 = vpop.permute.xlu0 %155  ;;  %2474 = vmatprep.subr.bf16.mxu0 %v2673_v11  ;;  %v283_v54 = vpack.c.bf16 %v270_v50, %v269_v49  ;;  %v638_v15 = vld [vmem:[#allocation2 + $0x1a] sm:$0xff] }
  0xd0   :  { %v228_v22 = vmax.f32 %v212_v16, 0.0  ;;  %v227_v23 = vmax.f32 %v211_v17, 0.0  ;;  %v192_v24 = vmul.f32 %v3029_v27, %v161_v19  ;;  %v191_v25 = vmul.f32 %v3029_v27, %v156_v20  ;;  %2460 = vmatprep.mubr.bf16.mxu0 %v325_v18  ;;  %v639_v16 = vld [vmem:[#allocation2 + $0x22] sm:$0xff]  ;;  %v640_v17 = vld [vmem:[#allocation2 + $0x32] sm:$0xff]  ;;  %v641_v18 = vld [vmem:[#allocation2 + $0x3a] sm:$0xff] }
  0xd1   :  { %v271_v56 = vld [vmem:[#allocation2 + $0x48] sm:$0xff]  ;;  %v272_v57 = vld [vmem:[#allocation2 + $0x50] sm:$0xff]  ;;  %v653_v19 = vpack.c.bf16 %v639_v16, %v638_v15  ;;  %v654_v20 = vpack.c.bf16 %v641_v18, %v640_v17  ;;  %v3074_v49 = vld [vmem:[%s3115_s4] ss:$0 sm:$0xff] }
  0xd2   :  { %260 = vst [vmem:[#allocation2 + $0x81] sm:$0xff] %v228_v22  ;;  %259 = vst [vmem:[#allocation2 + $0x79] sm:$0xff] %v227_v23  ;;  %v214_v26 = vadd.f32 %v3034_v28, %v192_v24  ;;  %v213_v29 = vadd.f32 %v3034_v28, %v191_v25  ;;  %2475 = vmatpush3.bf16.msra.mxu0 %v2673_v11  ;;  %v326_v30 = vpack.c.bf16 %v228_v22, %v227_v23  ;;  %v637_v11 = vld [vmem:[#allocation2 + $0xa] sm:$0xff]  ;;  %v643_v22 = vld [vmem:[#allocation2 + $0x52] sm:$0xff] }
  0xd3   :  { %v171_v31 = vpop.permute.xlu1 %170  ;;  %v166_v32 = vpop.permute.xlu0 %165  ;;  %2476 = vmatprep.subr.bf16.mxu0 %v2674_v21  ;;  %v284_v60 = vpack.c.bf16 %v272_v57, %v271_v56  ;;  %v652_v14 = vpack.c.bf16 %v637_v11, %v636_v10 }
  0xd4   :  { %v230_v34 = vmax.f32 %v214_v26, 0.0  ;;  %v229_v35 = vmax.f32 %v213_v29, 0.0  ;;  %v194_v36 = vmul.f32 %v3029_v27, %v171_v31  ;;  %v193_v37 = vmul.f32 %v3029_v27, %v166_v32  ;;  %v265_v27 = vld [vmem:[#allocation2] sm:$0xff] }
  0xd5   :  { %2461 = vmatmul.mubr.bf16.gmra.mrb[8].mxu0 %v326_v30  ;;  %v281_v47 = vpack.c.bf16 %v266_v44, %v265_v27  ;;  %v273_v58 = vld [vmem:[#allocation2 + $0x60] sm:$0xff]  ;;  %v274_v59 = vld [vmem:[#allocation2 + $0x68] sm:$0xff]  ;;  %v2692_v44 = vld [vmem:[#allocation10 + $0x70] sm:$0xff]  }
  0xd6   :  { %262 = vst [vmem:[#allocation2 + $0x99] sm:$0xff] %v230_v34  ;;  %261 = vst [vmem:[#allocation2 + $0x91] sm:$0xff] %v229_v35  ;;  %v216_v38 = vadd.f32 %v3034_v28, %v194_v36  ;;  %v215_v39 = vadd.f32 %v3034_v28, %v193_v37  ;;  %2477 = vmatpush3.bf16.msra.mxu0 %v2674_v21  ;;  %v327_v40 = vpack.c.bf16 %v230_v34, %v229_v35  ;;  %v2678_v28 = vld [vmem:[#allocation7 + $0x80] sm:$0xff]   ;;  %v642_v21 = vld [vmem:[#allocation2 + $0x4a] sm:$0xff] }
  0xd7   :  { %2478 = vmatprep.subr.bf16.mxu0 %v2675_v33  ;;  %v285_v62 = vpack.c.bf16 %v274_v59, %v273_v58  ;;  %v644_v23 = vld [vmem:[#allocation2 + $0x62] sm:$0xff]  ;;  %v645_v24 = vld [vmem:[#allocation2 + $0x6a] sm:$0xff]  ;;  %v655_v25 = vpack.c.bf16 %v643_v22, %v642_v21 }
  0xd8   :  { %v232_v42 = vmax.f32 %v216_v38, 0.0  ;;  %v231_v43 = vmax.f32 %v215_v39, 0.0  ;;  %2464 = vmatprep.mubr.bf16.mxu0 %v327_v40  ;;  %v656_v26 = vpack.c.bf16 %v645_v24, %v644_v23  ;;  %v2686_v38 = vld [vmem:[#allocation10 + $0x40] sm:$0xff]   ;;  %v2687_v39 = vld [vmem:[#allocation10 + $0x48] sm:$0xff]   ;;  %v2688_v40 = vld [vmem:[#allocation10 + $0x50] sm:$0xff]  }
  0xd9   :  { %v275_v0 = vld [vmem:[#allocation2 + $0x78] sm:$0xff]  ;;  %v276_v1 = vld [vmem:[#allocation2 + $0x80] sm:$0xff]  ;;  %2532 = vmatprep.subr.bf16.mxu1 %v2686_v38 }
  0xda   :  { %264 = vst [vmem:[#allocation2 + $0xb1] sm:$0xff] %v232_v42  ;;  %263 = vst [vmem:[#allocation2 + $0xa9] sm:$0xff] %v231_v43  ;;  %2479 = vmatpush3.bf16.msra.mxu0 %v2675_v33  ;;  %v328_v45 = vpack.c.bf16 %v232_v42, %v231_v43  ;;  %v286_v4 = vpack.c.bf16 %v276_v1, %v275_v0  ;;  %v646_v29 = vld [vmem:[#allocation2 + $0x7a] sm:$0xff]  ;;  %v647_v30 = vld [vmem:[#allocation2 + $0x82] sm:$0xff]  ;;  %2533 = vmatpush3.bf16.msra.mxu1 %v2686_v38 }
  0xdb   :  { %2480 = vmatprep.subr.bf16.mxu0 %v2676_v41  ;;  %v657_v33 = vpack.c.bf16 %v647_v30, %v646_v29  ;;  %2534 = vmatprep.subr.bf16.mxu1 %v2687_v39  ;;  %v2690_v42 = vld [vmem:[#allocation10 + $0x60] sm:$0xff]   ;;  %v2691_v43 = vld [vmem:[#allocation10 + $0x68] sm:$0xff]  }
  0xdc   :  { %v3068_v27 = vld [vmem:[#allocation10] sm:$0xff]  }
  0xdd   :  { %2465 = vmatmul.mubr.bf16.gmra.mrb[12].mxu0 %v328_v45  ;;  %v277_v2 = vld [vmem:[#allocation2 + $0x90] sm:$0xff]  ;;  %v278_v3 = vld [vmem:[#allocation2 + $0x98] sm:$0xff] }
  0xde   :  { %2481 = vmatpush3.bf16.msra.mxu0 %v2676_v41  ;;  %2484 = vmatprep.mubr.bf16.mxu0 %v281_v47  ;;  %v287_v6 = vpack.c.bf16 %v278_v3, %v277_v2  ;;  %v648_v31 = vld [vmem:[#allocation2 + $0x92] sm:$0xff]  ;;  %v649_v32 = vld [vmem:[#allocation2 + $0x9a] sm:$0xff] }
  0xdf   :  { %2482 = vmatprep.subr.bf16.mxu0 %v2677_v46  ;;  %v658_v34 = vpack.c.bf16 %v649_v32, %v648_v31  ;;  %2535 = vmatpush3.bf16.msra.mxu1 %v2687_v39  ;;  %v2689_v41 = vld [vmem:[#allocation10 + $0x58] sm:$0xff]   ;;  %v2712_v47 = vld [vmem:[#allocation12] sm:$0xff]  }
  0xe0   :  { %2536 = vmatprep.subr.bf16.mxu1 %v2688_v40  ;;  %v2693_v45 = vld [vmem:[#allocation10 + $0x78] sm:$0xff]  }
  0xe1   :  { %v279_v8 = vld [vmem:[#allocation2 + $0xa8] sm:$0xff]  ;;  %v280_v9 = vld [vmem:[#allocation2 + $0xb0] sm:$0xff] }
  0xe2   :  { %2483 = vmatpush3.bf16.msra.mxu0 %v2677_v46  ;;  %v288_v12 = vpack.c.bf16 %v280_v9, %v279_v8  ;;  %v650_v35 = vld [vmem:[#allocation2 + $0xaa] sm:$0xff]  ;;  %v651_v36 = vld [vmem:[#allocation2 + $0xb2] sm:$0xff]  ;;  %v2710_v46 = vld [vmem:[#allocation12 + $0x40] sm:$0xff]  }
  0xe3   :  { %2500 = vmatprep.subr.bf16.mxu0 %v2678_v28  ;;  %v659_v37 = vpack.c.bf16 %v651_v36, %v650_v35  ;;  %2537 = vmatpush3.bf16.msra.mxu1 %v2688_v40 }
  0xe4   :  { %2538 = vmatprep.subr.bf16.mxu1 %v2689_v41 }
  0xe5   :  { %2485 = vmatmul.mubr.bf16.vlgmr.msra.gmra.mrb[0].mxu0 %v282_v52 }
  0xe6   :  { %2501 = vmatpush3.bf16.msra.mxu0 %v2678_v28  ;;  %2488 = vmatprep.mubr.bf16.mxu0 %v283_v54  ;;  %v2714_v28 = vld [vmem:[#allocation12 + $0x48] sm:$0xff]  }
  0xe7   :  { %2502 = vmatprep.subr.bf16.mxu0 %v2679_v53  ;;  %2539 = vmatpush3.bf16.msra.mxu1 %v2689_v41 }
  0xe8   :  { %2540 = vmatprep.subr.bf16.mxu1 %v2690_v42 }
  0xea   :  { %2503 = vmatpush3.bf16.msra.mxu0 %v2679_v53 }
  0xeb   :  { %2504 = vmatprep.subr.bf16.mxu0 %v2680_v55  ;;  %2541 = vmatpush3.bf16.msra.mxu1 %v2690_v42 }
  0xec   :  { %2542 = vmatprep.subr.bf16.mxu1 %v2691_v43 }
  0xed   :  { %2489 = vmatmul.mubr.bf16.gmra.mrb[4].mxu0 %v284_v60 }
  0xee   :  { %2505 = vmatpush3.bf16.msra.mxu0 %v2680_v55  ;;  %2492 = vmatprep.mubr.bf16.mxu0 %v285_v62 }
  0xef   :  { %2506 = vmatprep.subr.bf16.mxu0 %v2681_v61  ;;  %2543 = vmatpush3.bf16.msra.mxu1 %v2691_v43  ;;  %v2697_v43 = vld [vmem:[#allocation10 + $0x18] sm:$0xff]  }
  0xf0   :  { %2544 = vmatprep.subr.bf16.mxu1 %v2692_v44 }
  0xf2   :  { %2507 = vmatpush3.bf16.msra.mxu0 %v2681_v61 }
  0xf3   :  { %2508 = vmatprep.subr.bf16.mxu0 %v2682_v63  ;;  %2545 = vmatpush3.bf16.msra.mxu1 %v2692_v44 }
  0xf4   :  { %2546 = vmatprep.subr.bf16.mxu1 %v2693_v45 }
  0xf5   :  { %2493 = vmatmul.mubr.bf16.gmra.mrb[8].mxu0 %v286_v4 }
  0xf6   :  { %2509 = vmatpush3.bf16.msra.mxu0 %v2682_v63  ;;  %2496 = vmatprep.mubr.bf16.mxu0 %v287_v6 }
  0xf7   :  { %2510 = vmatprep.subr.bf16.mxu0 %v2683_v5  ;;  %2547 = vmatpush3.bf16.msra.mxu1 %v2693_v45 }
  0xf8   :  { %2556 = vmatprep.subr.bf16.mxu1 %v3068_v27 }
  0xfa   :  { %2511 = vmatpush3.bf16.msra.mxu0 %v2683_v5 }
  0xfb   :  { %2512 = vmatprep.subr.bf16.mxu0 %v2684_v7 }
  0xfd   :  { %2497 = vmatmul.mubr.bf16.gmra.mrb[12].mxu0 %v288_v12 }
  0xfe   :  { %2513 = vmatpush3.bf16.msra.mxu0 %v2684_v7  ;;  %2516 = vmatprep.mubr.bf16.mxu0 %v652_v14 }
  0xff   :  { %2514 = vmatprep.subr.bf16.mxu0 %v2685_v13 }
 0x102   :  { %2515 = vmatpush3.bf16.msra.mxu0 %v2685_v13 }
 0x103   :  { %2348 = vmatprep.subr.bf16.mxu0 %v2710_v46 }
 0x105   :  { %2517 = vmatmul.mubr.bf16.vlgmr.msra.gmra.mrb[0].mxu0 %v653_v19 }
 0x106   :  { %2520 = vmatprep.mubr.bf16.mxu0 %v654_v20  ;;  %2349 = vmatpush3.bf16.msra.mxu0 %v2712_v47 }
 0x107   :  { %2350 = vmatprep.subr.bf16.mxu0 %v2714_v28 }
 0x10a   :  { %2351 = vmatpush3.bf16.msra.mxu0 %v2716_v48 }
 0x10d   :  { %2521 = vmatmul.mubr.bf16.gmra.mrb[4].mxu0 %v655_v25  ;;  %v2695_v25 = vld [vmem:[#allocation10 + $0x8] sm:$0xff]  }
 0x10e   :  { %2524 = vmatprep.mubr.bf16.mxu0 %v656_v26 }
 0x115   :  { %2525 = vmatmul.mubr.bf16.gmra.mrb[8].mxu0 %v657_v33 }
 0x116   :  { %2528 = vmatprep.mubr.bf16.mxu0 %v658_v34 }
 0x11d   :  { %2529 = vmatmul.mubr.bf16.gmra.mrb[12].mxu0 %v659_v37  ;;  %v2696_v37 = vld [vmem:[#allocation10 + $0x10] sm:$0xff]  }
 0x1d8   :  { %v2518_v50 = vpop.f32.mrb[0].mxu0 }
 0x1d9   :  { %v847_v51 = vadd.f32 %v2518_v50, %v3074_v49  ;;  %v759_v52 = vpop.f32.mrb[1].mxu0 }
 0x1da   :  { %v845_v53 = vadd.f32 %v3074_v49, %v759_v52  ;;  %v2519_v54 = vpop.f32.mrb[2].mxu0  ;;  %v2699_v52 = vld [vmem:[#allocation10 + $0x28] sm:$0xff]  }
 0x1db   :  { %863 = vst [vmem:[#allocation3 + $0x10] sm:$0xff] %v847_v51  ;;  %v848_v55 = vadd.f32 %v2519_v54, %v3074_v49  ;;  %v762_v56 = vpop.f32.mrb[3].mxu0  ;;  %v2700_v54 = vld [vmem:[#allocation10 + $0x30] sm:$0xff]  }
 0x1dc   :  { %861 = vst [vmem:[#allocation3] sm:$0xff] %v845_v53  ;;  %v846_v57 = vadd.f32 %v3074_v49, %v762_v56  ;;  %v2702_v56 = vld [vmem:[#allocation10 + $0x80] sm:$0xff]  }
 0x1dd   :  { %864 = vst [vmem:[#allocation3 + $0x18] sm:$0xff] %v848_v55  ;;  %v2701_v55 = vld [vmem:[#allocation10 + $0x38] sm:$0xff]  }
 0x1de   :  { %862 = vst [vmem:[#allocation3 + $0x8] sm:$0xff] %v846_v57 }
 0x1e0   :  { %v2522_v58 = vpop.f32.mrb[4].mxu0 }
 0x1e1   :  { %v851_v59 = vadd.f32 %v2522_v58, %v3074_v49  ;;  %v775_v60 = vpop.f32.mrb[5].mxu0 }
 0x1e2   :  { %v849_v61 = vadd.f32 %v3074_v49, %v775_v60  ;;  %v2523_v62 = vpop.f32.mrb[6].mxu0 }
 0x1e3   :  { %867 = vst [vmem:[#allocation3 + $0x30] sm:$0xff] %v851_v59  ;;  %v852_v63 = vadd.f32 %v2523_v62, %v3074_v49  ;;  %v778_v0 = vpop.f32.mrb[7].mxu0  ;;  %v2703_v62 = vld [vmem:[#allocation10 + $0x88] sm:$0xff]  }
 0x1e4   :  { %v879_v1 = vld [vmem:[#allocation3 + $0x10] ss:$2 sm:$0xff]  ;;  %v895_v2 = vld [vmem:[#allocation3 + $0x11] ss:$2 sm:$0xff]  ;;  %865 = vst [vmem:[#allocation3 + $0x20] sm:$0xff] %v849_v61  ;;  %v850_v3 = vadd.f32 %v3074_v49, %v778_v0 }
 0x1e5   :  { %v877_v4 = vld [vmem:[#allocation3] ss:$2 sm:$0xff]  ;;  %v893_v5 = vld [vmem:[#allocation3 + $0x1] ss:$2 sm:$0xff]  ;;  %868 = vst [vmem:[#allocation3 + $0x38] sm:$0xff] %v852_v63  ;;  %v909_v6 = vmax.f32 %v879_v1, %v895_v2  ;;  %v2704_v0 = vld [vmem:[#allocation10 + $0x90] sm:$0xff]  }
 0x1e6   :  { %866 = vst [vmem:[#allocation3 + $0x28] sm:$0xff] %v850_v3  ;;  %v908_v7 = vmax.f32 %v877_v4, %v893_v5 }
 0x1e7   :  { %933 = vst [vmem:[#allocation4 + $0x11] sm:$0xff] %v909_v6 }
 0x1e8   :  { %v2526_v8 = vpop.f32.mrb[8].mxu0  ;;  %932 = vst [vmem:[#allocation4 + $0x1] sm:$0xff] %v908_v7  ;;  %v976_v9 = vpack.c.bf16 %v909_v6, %v908_v7  ;;  %v2705_v6 = vld [vmem:[#allocation10 + $0x98] sm:$0xff]  }
 0x1e9   :  { %v855_v10 = vadd.f32 %v2526_v8, %v3074_v49  ;;  %v791_v11 = vpop.f32.mrb[9].mxu0  ;;  %v2706_v8 = vld [vmem:[#allocation10 + $0xa0] sm:$0xff]  }
 0x1ea   :  { %v853_v12 = vadd.f32 %v3074_v49, %v791_v11  ;;  %v2527_v13 = vpop.f32.mrb[10].mxu0  ;;  %2548 = vmatprep.mubr.bf16.mxu1 %v976_v9  ;;  %v2707_v9 = vld [vmem:[#allocation10 + $0xa8] sm:$0xff]   ;;  %v2709_v11 = vld [vmem:[#allocation10 + $0xb8] sm:$0xff]  }
 0x1eb   :  { %871 = vst [vmem:[#allocation3 + $0x50] sm:$0xff] %v855_v10  ;;  %v856_v14 = vadd.f32 %v2527_v13, %v3074_v49  ;;  %v794_v15 = vpop.f32.mrb[11].mxu0  ;;  %v2708_v10 = vld [vmem:[#allocation10 + $0xb0] sm:$0xff]  }
 0x1ec   :  { %v883_v16 = vld [vmem:[#allocation3 + $0x30] ss:$2 sm:$0xff]  ;;  %v899_v17 = vld [vmem:[#allocation3 + $0x31] ss:$2 sm:$0xff]  ;;  %869 = vst [vmem:[#allocation3 + $0x40] sm:$0xff] %v853_v12  ;;  %v854_v18 = vadd.f32 %v3074_v49, %v794_v15  ;;  %v2711_v12 = vld [vmem:[#allocation12 + $0xc0] sm:$0xff]  }
 0x1ed   :  { %v911_v19 = vmax.f32 %v883_v16, %v899_v17  ;;  %v881_v20 = vld [vmem:[#allocation3 + $0x20] ss:$2 sm:$0xff]  ;;  %v897_v21 = vld [vmem:[#allocation3 + $0x21] ss:$2 sm:$0xff]  ;;  %872 = vst [vmem:[#allocation3 + $0x58] sm:$0xff] %v856_v14 }
 0x1ee   :  { %v910_v22 = vmax.f32 %v881_v20, %v897_v21  ;;  %870 = vst [vmem:[#allocation3 + $0x48] sm:$0xff] %v854_v18  ;;  %v941_v50 = vld [vmem:[#allocation4 + $0x10] sm:$0xff]  ;;  %v2713_v17 = vld [vmem:[#allocation12 + $0x80] sm:$0xff]   ;;  %v2717_v21 = vld [vmem:[#allocation12 + $0x88] sm:$0xff]  }
 0x1ef   :  { %935 = vst [vmem:[#allocation4 + $0x31] sm:$0xff] %v911_v19  ;;  %v1223_v3 = vld [vmem:[#allocation4 + $0x2] sm:$0xff]  ;;  %v1224_v4 = vld [vmem:[#allocation4 + $0x12] sm:$0xff] }
 0x1f0   :  { %934 = vst [vmem:[#allocation4 + $0x21] sm:$0xff] %v910_v22  ;;  %v2530_v23 = vpop.f32.mrb[12].mxu0  ;;  %v977_v24 = vpack.c.bf16 %v911_v19, %v910_v22  ;;  %v1231_v7 = vpack.c.bf16 %v1224_v4, %v1223_v3  ;;  %v2715_v19 = vld [vmem:[#allocation12 + $0xc8] sm:$0xff]  }
 0x1f1   :  { %v859_v26 = vadd.f32 %v2530_v23, %v3074_v49  ;;  %v807_v29 = vpop.f32.mrb[13].mxu0 }
 0x1f2   :  { %v857_v30 = vadd.f32 %v3074_v49, %v807_v29  ;;  %v2531_v31 = vpop.f32.mrb[14].mxu0  ;;  %2549 = vmatmul.mubr.bf16.vlgmr.msra.gmra.mrb[0].mxu1 %v977_v24  ;;  %v2720_v29 = vld [vmem:[#allocation12 + $0x10] sm:$0xff]  }
 0x1f3   :  { %875 = vst [vmem:[#allocation3 + $0x70] sm:$0xff] %v859_v26  ;;  %v860_v32 = vadd.f32 %v2531_v31, %v3074_v49  ;;  %v810_v33 = vpop.f32.mrb[15].mxu0  ;;  %2557 = vmatpush3.bf16.msra.mxu1 %v3068_v27  ;;  %v2698_v27 = vld [vmem:[#allocation10 + $0x20] sm:$0xff]   ;;  %v2719_v26 = vld [vmem:[#allocation12 + $0xd0] sm:$0xff]   ;;  %v2722_v31 = vld [vmem:[#allocation12 + $0x58] sm:$0xff]  }
 0x1f4   :  { %v887_v34 = vld [vmem:[#allocation3 + $0x50] ss:$2 sm:$0xff]  ;;  %v903_v35 = vld [vmem:[#allocation3 + $0x51] ss:$2 sm:$0xff]  ;;  %873 = vst [vmem:[#allocation3 + $0x60] sm:$0xff] %v857_v30  ;;  %v858_v36 = vadd.f32 %v3074_v49, %v810_v33  ;;  %2558 = vmatprep.subr.bf16.mxu1 %v2695_v25  ;;  %v940_v49 = vld [vmem:[#allocation4] sm:$0xff] }
 0x1f5   :  { %v913_v38 = vmax.f32 %v887_v34, %v903_v35  ;;  %v885_v39 = vld [vmem:[#allocation3 + $0x40] ss:$2 sm:$0xff]  ;;  %v901_v40 = vld [vmem:[#allocation3 + $0x41] ss:$2 sm:$0xff]  ;;  %876 = vst [vmem:[#allocation3 + $0x78] sm:$0xff] %v860_v32  ;;  %v948_v53 = vpack.c.bf16 %v941_v50, %v940_v49  ;;  %v2721_v30 = vld [vmem:[#allocation12 + $0x90] sm:$0xff]  }
 0x1f6   :  { %v912_v41 = vmax.f32 %v885_v39, %v901_v40  ;;  %874 = vst [vmem:[#allocation3 + $0x68] sm:$0xff] %v858_v36  ;;  %v943_v58 = vld [vmem:[#allocation4 + $0x30] sm:$0xff]  ;;  %v2723_v32 = vld [vmem:[#allocation12 + $0xd8] sm:$0xff]   ;;  %v2726_v35 = vld [vmem:[#allocation12 + $0x60] sm:$0xff]  }
 0x1f7   :  { %937 = vst [vmem:[#allocation4 + $0x51] sm:$0xff] %v913_v38  ;;  %2559 = vmatpush3.bf16.msra.mxu1 %v2695_v25  ;;  %v942_v57 = vld [vmem:[#allocation4 + $0x20] sm:$0xff]  ;;  %v1226_v14 = vld [vmem:[#allocation4 + $0x32] sm:$0xff]  ;;  %v2730_v39 = vld [vmem:[#allocation12 + $0x68] sm:$0xff]  }
 0x1f8   :  { %936 = vst [vmem:[#allocation4 + $0x41] sm:$0xff] %v912_v41  ;;  %2560 = vmatprep.subr.bf16.mxu1 %v2696_v37  ;;  %v978_v42 = vpack.c.bf16 %v913_v38, %v912_v41  ;;  %v949_v61 = vpack.c.bf16 %v943_v58, %v942_v57  ;;  %v1225_v13 = vld [vmem:[#allocation4 + $0x22] sm:$0xff]  ;;  %v2718_v25 = vld [vmem:[#allocation12 + $0x50] sm:$0xff]   ;;  %v2724_v33 = vld [vmem:[#allocation12 + $0x18] sm:$0xff]  }
 0x1f9   :  { %v1232_v18 = vpack.c.bf16 %v1226_v14, %v1225_v13  ;;  %2352 = vmatprep.subr.bf16.mxu0 %v2718_v25  ;;  %v2725_v34 = vld [vmem:[#allocation12 + $0x98] sm:$0xff]   ;;  %v2727_v36 = vld [vmem:[#allocation12 + $0xe0] sm:$0xff]   ;;  %v2731_v40 = vld [vmem:[#allocation12 + $0xe8] sm:$0xff]  }
 0x1fa   :  { %2552 = vmatprep.mubr.bf16.mxu1 %v978_v42  ;;  %2353 = vmatpush3.bf16.msra.mxu0 %v2720_v29  ;;  %v2729_v38 = vld [vmem:[#allocation12 + $0xa0] sm:$0xff]   ;;  %v2732_v41 = vld [vmem:[#allocation12 + $0x28] sm:$0xff]  }
 0x1fb   :  { %2561 = vmatpush3.bf16.msra.mxu1 %v2696_v37  ;;  %2354 = vmatprep.subr.bf16.mxu0 %v2722_v31  ;;  %v2728_v37 = vld [vmem:[#allocation12 + $0x20] sm:$0xff]   ;;  %v2733_v42 = vld [vmem:[#allocation12 + $0xa8] sm:$0xff]  }
 0x1fc   :  { %v891_v44 = vld [vmem:[#allocation3 + $0x70] ss:$2 sm:$0xff]  ;;  %v907_v45 = vld [vmem:[#allocation3 + $0x71] ss:$2 sm:$0xff]  ;;  %2562 = vmatprep.subr.bf16.mxu1 %v2697_v43  ;;  %v2742_v49 = vld [vmem:[#allocation12 + $0x140] sm:$0xff]  }
 0x1fd   :  { %v915_v46 = vmax.f32 %v891_v44, %v907_v45  ;;  %v889_v47 = vld [vmem:[#allocation3 + $0x60] ss:$2 sm:$0xff]  ;;  %v905_v28 = vld [vmem:[#allocation3 + $0x61] ss:$2 sm:$0xff]  ;;  %v2735_v44 = vld [vmem:[#allocation12 + $0xf0] sm:$0xff]  }
 0x1fe   :  { %v914_v48 = vmax.f32 %v889_v47, %v905_v28  ;;  %v945_v60 = vld [vmem:[#allocation4 + $0x50] sm:$0xff]  ;;  %2355 = vmatpush3.bf16.msra.mxu0 %v2724_v33  ;;  %v2739_v47 = vld [vmem:[#allocation12 + $0xf8] sm:$0xff]   ;;  %v2743_v50 = vld [vmem:[#allocation12 + $0x1c0] sm:$0xff]  }
 0x1ff   :  { %939 = vst [vmem:[#allocation4 + $0x71] sm:$0xff] %v915_v46  ;;  %2563 = vmatpush3.bf16.msra.mxu1 %v2697_v43  ;;  %v944_v59 = vld [vmem:[#allocation4 + $0x40] sm:$0xff]  ;;  %v1228_v16 = vld [vmem:[#allocation4 + $0x52] sm:$0xff]  ;;  %2356 = vmatprep.subr.bf16.mxu0 %v2726_v35  ;;  %v2747_v31 = vld [vmem:[#allocation12 + $0x1c8] sm:$0xff]  }
 0x200   :  { %938 = vst [vmem:[#allocation4 + $0x61] sm:$0xff] %v914_v48  ;;  %2564 = vmatprep.subr.bf16.mxu1 %v2698_v27  ;;  %v979_v51 = vpack.c.bf16 %v915_v46, %v914_v48  ;;  %v950_v63 = vpack.c.bf16 %v945_v60, %v944_v59  ;;  %v1227_v15 = vld [vmem:[#allocation4 + $0x42] sm:$0xff]  ;;  %v2734_v43 = vld [vmem:[#allocation12 + $0x70] sm:$0xff]   ;;  %v2738_v46 = vld [vmem:[#allocation12 + $0x78] sm:$0xff]  }
 0x201   :  { %v1233_v20 = vpack.c.bf16 %v1228_v16, %v1227_v15  ;;  %v2736_v45 = vld [vmem:[#allocation12 + $0x30] sm:$0xff]   ;;  %v2740_v28 = vld [vmem:[#allocation12 + $0x38] sm:$0xff]   ;;  %v2749_v35 = vld [vmem:[#allocation12 + $0x188] sm:$0xff]  }
 0x202   :  { %2553 = vmatmul.mubr.bf16.gmra.mrb[4].mxu1 %v979_v51  ;;  %2357 = vmatpush3.bf16.msra.mxu0 %v2728_v37  ;;  %v2741_v48 = vld [vmem:[#allocation12 + $0xb8] sm:$0xff]   ;;  %v2198_v51 = vld [vmem:[%s3117_s6] ss:$0 sm:$0xff]  ;;  %v2751_v37 = vld [vmem:[#allocation12 + $0x1d0] sm:$0xff]  }
 0x203   :  { %2565 = vmatpush3.bf16.msra.mxu1 %v2698_v27  ;;  %2572 = vmatprep.mubr.bf16.mxu1 %v948_v53  ;;  %v2737_v27 = vld [vmem:[#allocation12 + $0xb0] sm:$0xff]  }
 0x204   :  { %2566 = vmatprep.subr.bf16.mxu1 %v2699_v52  ;;  %2358 = vmatprep.subr.bf16.mxu0 %v2730_v39  ;;  %v2753_v39 = vld [vmem:[#allocation12 + $0x190] sm:$0xff]  }
 0x206   :  { %v947_v2 = vld [vmem:[#allocation4 + $0x70] sm:$0xff]  ;;  %2359 = vmatpush3.bf16.msra.mxu0 %v2732_v41  ;;  %v2755_v41 = vld [vmem:[#allocation12 + $0x1d8] sm:$0xff]  }
 0x207   :  { %2567 = vmatpush3.bf16.msra.mxu1 %v2699_v52  ;;  %v946_v1 = vld [vmem:[#allocation4 + $0x60] sm:$0xff]  ;;  %v1230_v23 = vld [vmem:[#allocation4 + $0x72] sm:$0xff]  ;;  %2360 = vmatprep.subr.bf16.mxu0 %v2734_v43 }
 0x208   :  { %2568 = vmatprep.subr.bf16.mxu1 %v2700_v54  ;;  %v951_v5 = vpack.c.bf16 %v947_v2, %v946_v1  ;;  %v1229_v22 = vld [vmem:[#allocation4 + $0x62] sm:$0xff]  ;;  %v2757_v43 = vld [vmem:[#allocation12 + $0x198] sm:$0xff]  }
 0x209   :  { %v1234_v24 = vpack.c.bf16 %v1230_v23, %v1229_v22  ;;  %v2744_v22 = vld [vmem:[#allocation12 + $0x100] sm:$0xff]  }
 0x20a   :  { %2361 = vmatpush3.bf16.msra.mxu0 %v2736_v45  ;;  %v2745_v23 = vld [vmem:[#allocation12 + $0x180] sm:$0xff]  }
 0x20b   :  { %2569 = vmatpush3.bf16.msra.mxu1 %v2700_v54  ;;  %2362 = vmatprep.subr.bf16.mxu0 %v2738_v46  ;;  %v2759_v45 = vld [vmem:[#allocation12 + $0x1e0] sm:$0xff]  }
 0x20c   :  { %2570 = vmatprep.subr.bf16.mxu1 %v2701_v55  ;;  %v2761_v46 = vld [vmem:[#allocation12 + $0x1a0] sm:$0xff]  }
 0x20e   :  { %2363 = vmatpush3.bf16.msra.mxu0 %v2740_v28  ;;  %v2763_v28 = vld [vmem:[#allocation12 + $0x1e8] sm:$0xff]  }
 0x20f   :  { %2571 = vmatpush3.bf16.msra.mxu1 %v2701_v55  ;;  %2392 = vmatprep.subr.bf16.mxu0 %v2742_v49  ;;  %v2765_v49 = vld [vmem:[#allocation12 + $0x1a8] sm:$0xff]  }
 0x210   :  { %2580 = vmatprep.subr.bf16.mxu1 %v2702_v56 }
 0x212   :  { %2573 = vmatmul.mubr.bf16.vlgmr.msra.gmra.mrb[0].mxu1 %v949_v61 }
 0x213   :  { %2576 = vmatprep.mubr.bf16.mxu1 %v950_v63  ;;  %2581 = vmatpush3.bf16.msra.mxu1 %v2702_v56 }
 0x214   :  { %2582 = vmatprep.subr.bf16.mxu1 %v2703_v62 }
 0x217   :  { %2583 = vmatpush3.bf16.msra.mxu1 %v2703_v62 }
 0x218   :  { %2584 = vmatprep.subr.bf16.mxu1 %v2704_v0 }
 0x21a   :  { %2577 = vmatmul.mubr.bf16.gmra.mrb[4].mxu1 %v951_v5 }
 0x21b   :  { %2585 = vmatpush3.bf16.msra.mxu1 %v2704_v0  ;;  %2596 = vmatprep.mubr.bf16.mxu1 %v1231_v7 }
 0x21c   :  { %2586 = vmatprep.subr.bf16.mxu1 %v2705_v6 }
 0x21f   :  { %2587 = vmatpush3.bf16.msra.mxu1 %v2705_v6 }
 0x220   :  { %2588 = vmatprep.subr.bf16.mxu1 %v2706_v8 }
 0x223   :  { %2589 = vmatpush3.bf16.msra.mxu1 %v2706_v8 }
 0x224   :  { %2590 = vmatprep.subr.bf16.mxu1 %v2707_v9 }
 0x227   :  { %2591 = vmatpush3.bf16.msra.mxu1 %v2707_v9 }
 0x228   :  { %2592 = vmatprep.subr.bf16.mxu1 %v2708_v10 }
 0x22b   :  { %2593 = vmatpush3.bf16.msra.mxu1 %v2708_v10 }
 0x22c   :  { %2594 = vmatprep.subr.bf16.mxu1 %v2709_v11 }
 0x22f   :  { %2595 = vmatpush3.bf16.msra.mxu1 %v2709_v11 }
 0x230   :  { %2370 = vmatprep.subr.bf16.mxu1 %v2711_v12 }
 0x232   :  { %2597 = vmatmul.mubr.bf16.vlgmr.msra.gmra.mrb[0].mxu1 %v1232_v18 }
 0x233   :  { %2600 = vmatprep.mubr.bf16.mxu1 %v1233_v20  ;;  %2371 = vmatpush3.bf16.msra.mxu1 %v2713_v17 }
 0x234   :  { %2372 = vmatprep.subr.bf16.mxu1 %v2715_v19 }
 0x237   :  { %2373 = vmatpush3.bf16.msra.mxu1 %v2717_v21 }
 0x238   :  { %2374 = vmatprep.subr.bf16.mxu1 %v2719_v26 }
 0x23a   :  { %2601 = vmatmul.mubr.bf16.gmra.mrb[4].mxu1 %v1234_v24 }
 0x23b   :  { %2375 = vmatpush3.bf16.msra.mxu1 %v2721_v30  ;;  %v2746_v30 = vld [vmem:[#allocation12 + $0x148] sm:$0xff]  }
 0x23c   :  { %2376 = vmatprep.subr.bf16.mxu1 %v2723_v32 }
 0x23f   :  { %2377 = vmatpush3.bf16.msra.mxu1 %v2725_v34  ;;  %v2748_v34 = vld [vmem:[#allocation12 + $0x108] sm:$0xff]  }
 0x240   :  { %2378 = vmatprep.subr.bf16.mxu1 %v2727_v36  ;;  %v2750_v36 = vld [vmem:[#allocation12 + $0x150] sm:$0xff]  }
 0x243   :  { %2379 = vmatpush3.bf16.msra.mxu1 %v2729_v38  ;;  %v2752_v38 = vld [vmem:[#allocation12 + $0x110] sm:$0xff]  }
 0x244   :  { %2380 = vmatprep.subr.bf16.mxu1 %v2731_v40  ;;  %v2754_v40 = vld [vmem:[#allocation12 + $0x158] sm:$0xff]  }
 0x247   :  { %2381 = vmatpush3.bf16.msra.mxu1 %v2733_v42  ;;  %v2756_v42 = vld [vmem:[#allocation12 + $0x118] sm:$0xff]  }
 0x248   :  { %2382 = vmatprep.subr.bf16.mxu1 %v2735_v44  ;;  %v2758_v44 = vld [vmem:[#allocation12 + $0x160] sm:$0xff]  }
 0x24b   :  { %2383 = vmatpush3.bf16.msra.mxu1 %v2737_v27  ;;  %v2760_v27 = vld [vmem:[#allocation12 + $0x120] sm:$0xff]  }
 0x24c   :  { %2384 = vmatprep.subr.bf16.mxu1 %v2739_v47  ;;  %v2762_v47 = vld [vmem:[#allocation12 + $0x168] sm:$0xff]  }
 0x24f   :  { %2385 = vmatpush3.bf16.msra.mxu1 %v2741_v48  ;;  %v2764_v48 = vld [vmem:[#allocation12 + $0x128] sm:$0xff]  }
 0x250   :  { %2414 = vmatprep.subr.bf16.mxu1 %v2743_v50  ;;  %v2766_v50 = vld [vmem:[#allocation12 + $0x170] sm:$0xff]  }
 0x305   :  { %v2598_v52 = vpop.f32.mrb[0].mxu1 }
 0x306   :  { %v1382_v53 = vadd.f32 %v2598_v52, %v2198_v51  ;;  %v1334_v54 = vpop.f32.mrb[1].mxu1  ;;  %v2768_v52 = vld [vmem:[#allocation12 + $0x130] sm:$0xff]  }
 0x307   :  { %v1380_v55 = vadd.f32 %v2198_v51, %v1334_v54  ;;  %v2599_v56 = vpop.f32.mrb[2].mxu1  ;;  %v2770_v54 = vld [vmem:[#allocation12 + $0x178] sm:$0xff]  }
 0x308   :  { %1390 = vst [vmem:[#allocation5 + $0x10] sm:$0xff] %v1382_v53  ;;  %v1383_v57 = vadd.f32 %v2599_v56, %v2198_v51  ;;  %v1337_v58 = vpop.f32.mrb[3].mxu1  ;;  %v2769_v53 = vld [vmem:[#allocation12 + $0x1b0] sm:$0xff]  }
 0x309   :  { %1388 = vst [vmem:[#allocation5] sm:$0xff] %v1380_v55  ;;  %v1381_v59 = vadd.f32 %v2198_v51, %v1337_v58  ;;  %v2771_v55 = vld [vmem:[#allocation12 + $0x1f8] sm:$0xff]  }
 0x30a   :  { %1391 = vst [vmem:[#allocation5 + $0x18] sm:$0xff] %v1383_v57  ;;  %v2772_v58 = vld [vmem:[#allocation12 + $0x138] sm:$0xff]  }
 0x30b   :  { %1389 = vst [vmem:[#allocation5 + $0x8] sm:$0xff] %v1381_v59  ;;  %v2773_v59 = vld [vmem:[#allocation12 + $0x1b8] sm:$0xff]  }
 0x30d   :  { %v2602_v60 = vpop.f32.mrb[4].mxu1 }
 0x30e   :  { %v1386_v61 = vadd.f32 %v2602_v60, %v2198_v51  ;;  %v1350_v62 = vpop.f32.mrb[5].mxu1 }
 0x30f   :  { %v1384_v63 = vadd.f32 %v2198_v51, %v1350_v62  ;;  %v2603_v0 = vpop.f32.mrb[6].mxu1 }
 0x310   :  { %1394 = vst [vmem:[#allocation5 + $0x30] sm:$0xff] %v1386_v61  ;;  %v1387_v1 = vadd.f32 %v2603_v0, %v2198_v51  ;;  %v1353_v2 = vpop.f32.mrb[7].mxu1 }
 0x311   :  { %1392 = vst [vmem:[#allocation5 + $0x20] sm:$0xff] %v1384_v63  ;;  %v1385_v3 = vadd.f32 %v2198_v51, %v1353_v2  ;;  %v2767_v51 = vld [vmem:[#allocation12 + $0x1f0] sm:$0xff]  }
 0x312   :  { %1395 = vst [vmem:[#allocation5 + $0x38] sm:$0xff] %v1387_v1  ;;  %v1401_v4 = vld [vmem:[#allocation5 + $0x1] ss:$8 sm:$0xf] }
 0x313   :  { %1393 = vst [vmem:[#allocation5 + $0x28] sm:$0xff] %v1385_v3  ;;  %v1411_v5 = vld [vmem:[#allocation5 + $0x3] ss:$8 sm:$0xf] }
 0x314   :  { %v1396_v6 = vld [vmem:[#allocation5] ss:$8 sm:$0xf]  ;;  %v1406_v7 = vld [vmem:[#allocation5 + $0x2] ss:$8 sm:$0xf] }
 0x315   :  { %v1421_v10 = vld [vmem:[#allocation5 + $0x5] ss:$8 sm:$0xf]  ;;  %v1431_v11 = vld [vmem:[#allocation5 + $0x7] ss:$8 sm:$0xf] }
 0x316   :  { %v1416_v60 = vld [vmem:[#allocation5 + $0x4] ss:$8 sm:$0xf]  ;;  %v1426_v61 = vld [vmem:[#allocation5 + $0x6] ss:$8 sm:$0xf] }
 0x31a   :  { %v1402_v8 = vld [vmem:[#allocation5 + $0x1] ss:$8 sm:$0xf0]  ;;  %v1412_v9 = vld [vmem:[#allocation5 + $0x3] ss:$8 sm:$0xf0] }
 0x31b   :  { %v1403_v12 = vor.u32 %v1402_v8, %v1401_v4  ;;  %v1413_v13 = vor.u32 %v1412_v9, %v1411_v5  ;;  %v1397_v14 = vld [vmem:[#allocation5] ss:$8 sm:$0xf0]  ;;  %v1407_v15 = vld [vmem:[#allocation5 + $0x2] ss:$8 sm:$0xf0] }
 0x31c   :  { %v1398_v16 = vor.u32 %v1397_v14, %v1396_v6  ;;  %v1408_v17 = vor.u32 %v1407_v15, %v1406_v7  ;;  %v1422_v18 = vld [vmem:[#allocation5 + $0x5] ss:$8 sm:$0xf0]  ;;  %v1432_v19 = vld [vmem:[#allocation5 + $0x7] ss:$8 sm:$0xf0] }
 0x31d   :  { %v1444_v20 = vpack.c.bf16 %v1403_v12, %v1403_v12  ;;  %v1446_v21 = vpack.c.bf16 %v1413_v13, %v1413_v13  ;;  %v1423_v24 = vor.u32 %v1422_v18, %v1421_v10  ;;  %v1433_v25 = vor.u32 %v1432_v19, %v1431_v11  ;;  %v1417_v56 = vld [vmem:[#allocation5 + $0x4] ss:$8 sm:$0xf0]  ;;  %v1427_v57 = vld [vmem:[#allocation5 + $0x6] ss:$8 sm:$0xf0] }
 0x31e   :  { %v1443_v26 = vpack.c.bf16 %v1398_v16, %v1398_v16  ;;  %v1445_v29 = vpack.c.bf16 %v1408_v17, %v1408_v17  ;;  %v1418_v62 = vor.u32 %v1417_v56, %v1416_v60  ;;  %v1428_v63 = vor.u32 %v1427_v57, %v1426_v61  ;;  %v2199_v4 = vld [vmem:[%s3119_s8] ss:$0 sm:$0xff]  ;;  %s2875_s8 = smov [#allocation13]  }
 0x31f   :  { %2002 = vmatprep.mubr.bf16.mxu0 %v1444_v20  ;;  %2042 = vmatprep.mubr.bf16.mxu1 %v1446_v21  ;;  %v1448_v32 = vpack.c.bf16 %v1423_v24, %v1423_v24  ;;  %v1450_v33 = vpack.c.bf16 %v1433_v25, %v1433_v25  ;;  %s2137_s15 = sshll.u32 %s2875_s8, 4  ;;  %s2138_s15 = int_to_ptr.vmem [resolvable:$true] %s2137_s15 }
 0x320   :  { %2003 = vmatmul.mubr.bf16.vlgmr.msra.gmra.mrb[16].mxu0 %v1443_v26  ;;  %2043 = vmatmul.mubr.bf16.vlgmr.msra.gmra.mrb[8].mxu1 %v1445_v29  ;;  %v1447_v0 = vpack.c.bf16 %v1418_v62, %v1418_v62  ;;  %v1449_v1 = vpack.c.bf16 %v1428_v63, %v1428_v63  ;;  %s2840_s16 = scalar_lea.vmem %s2138_s15, 128  ;;  %p2845_p11 = scmp.lt.s32.totalorder %s2138_s15, %s2138_s15 }
 0x321   :  { %2393 = vmatpush3.bf16.msra.mxu0 %v2744_v22  ;;  %2415 = vmatpush3.bf16.msra.mxu1 %v2745_v23  ;;  %p2841_p10 = scmp.ne.s32.totalorder %s2138_s15, %s2840_s16  ;;  %p2846_p12 = scmp.lt.s32.totalorder %s2840_s16, %s2840_s16 }
 0x322   :  { %2082 = vmatprep.mubr.bf16.mxu0 %v1448_v32  ;;  %2122 = vmatprep.mubr.bf16.mxu1 %v1450_v33 }
 0x323   :  { %2394 = vmatprep.subr.bf16.mxu0 %v2746_v30  ;;  %2416 = vmatprep.subr.bf16.mxu1 %v2747_v31  ;;  %p2847_p13 = por %p2846_p12, %p2845_p11 }
 0x325   :  { %2395 = vmatpush3.bf16.msra.mxu0 %v2748_v34  ;;  %2417 = vmatpush3.bf16.msra.mxu1 %v2749_v35  ;;  %p2848_p0 = pnand %p2847_p13, %p2841_p10 }
 0x326   :  { %2396 = vmatprep.subr.bf16.mxu0 %v2750_v36  ;;  %2418 = vmatprep.subr.bf16.mxu1 %v2751_v37 }
 0x329   :  { %2397 = vmatpush3.bf16.msra.mxu0 %v2752_v38  ;;  %2419 = vmatpush3.bf16.msra.mxu1 %v2753_v39 }
 0x32a   :  { %2398 = vmatprep.subr.bf16.mxu0 %v2754_v40  ;;  %2420 = vmatprep.subr.bf16.mxu1 %v2755_v41 }
 0x32d   :  { %2399 = vmatpush3.bf16.msra.mxu0 %v2756_v42  ;;  %2421 = vmatpush3.bf16.msra.mxu1 %v2757_v43 }
 0x32e   :  { %2400 = vmatprep.subr.bf16.mxu0 %v2758_v44  ;;  %2422 = vmatprep.subr.bf16.mxu1 %v2759_v45 }
 0x331   :  { %2401 = vmatpush3.bf16.msra.mxu0 %v2760_v27  ;;  %2423 = vmatpush3.bf16.msra.mxu1 %v2761_v46 }
 0x332   :  { %2402 = vmatprep.subr.bf16.mxu0 %v2762_v47  ;;  %2424 = vmatprep.subr.bf16.mxu1 %v2763_v28 }
 0x335   :  { %2403 = vmatpush3.bf16.msra.mxu0 %v2764_v48  ;;  %2425 = vmatpush3.bf16.msra.mxu1 %v2765_v49 }
 0x336   :  { %2404 = vmatprep.subr.bf16.mxu0 %v2766_v50  ;;  %2426 = vmatprep.subr.bf16.mxu1 %v2767_v51 }
 0x339   :  { %2405 = vmatpush3.bf16.msra.mxu0 %v2768_v52  ;;  %2427 = vmatpush3.bf16.msra.mxu1 %v2769_v53 }
 0x33a   :  { %2406 = vmatprep.subr.bf16.mxu0 %v2770_v54  ;;  %2428 = vmatprep.subr.bf16.mxu1 %v2771_v55 }
 0x33d   :  { %2407 = vmatpush3.bf16.msra.mxu0 %v2772_v58  ;;  %2429 = vmatpush3.bf16.msra.mxu1 %v2773_v59 }
 0x340   :  { %2083 = vmatmul.mubr.bf16.vlgmr.msra.gmra.mrb[20].mxu0 %v1447_v0  ;;  %2123 = vmatmul.mubr.bf16.vlgmr.msra.gmra.mrb[12].mxu1 %v1449_v1 }
 0x3f3   :  { %v2364_v2 = vpop.f32.mrb[16].mxu0  ;;  %v2386_v3 = vpop.f32.mrb[8].mxu1 }
 0x3f4   :  { %v2365_v5 = vpop.f32.mrb[17].mxu0  ;;  %v2387_v6 = vpop.f32.mrb[9].mxu1 }
 0x3f5   :  { %v2366_v7 = vadd.f32 %v2365_v5, %v2364_v2  ;;  %v2388_v8 = vadd.f32 %v2387_v6, %v2386_v3  ;;  %v2367_v9 = vpop.f32.mrb[18].mxu0  ;;  %v2389_v10 = vpop.f32.mrb[10].mxu1 }
 0x3f6   :  { %v2368_v11 = vpop.f32.mrb[19].mxu0  ;;  %v2390_v12 = vpop.f32.mrb[11].mxu1 }
 0x3f7   :  { %v2005_v13 = vadd.f32 %v2366_v7, %v2199_v4 }
 0x3f9   :  { %v2045_v14 = vadd.f32 %v2388_v8, %v2005_v13 }
 0x413   :  { %v2408_v15 = vpop.f32.mrb[20].mxu0  ;;  %v2430_v16 = vpop.f32.mrb[12].mxu1 }
 0x414   :  { %v2409_v17 = vpop.f32.mrb[21].mxu0  ;;  %v2431_v18 = vpop.f32.mrb[13].mxu1 }
 0x415   :  { %v2410_v19 = vadd.f32 %v2409_v17, %v2408_v15  ;;  %v2432_v20 = vadd.f32 %v2431_v18, %v2430_v16  ;;  %v2411_v21 = vpop.f32.mrb[22].mxu0  ;;  %v2433_v22 = vpop.f32.mrb[14].mxu1 }
 0x416   :  { %v2412_v23 = vpop.f32.mrb[23].mxu0  ;;  %v2434_v24 = vpop.f32.mrb[15].mxu1 }
 0x417   :  { %v2085_v25 = vadd.f32 %v2410_v19, %v2045_v14 }
 0x419   :  { %v2125_v26 = vadd.f32 %v2432_v20, %v2085_v25 }
 0x41b   :  { %2130 = vst [vmem:[#allocation13] sm:$0xff] %v2125_v26 }
 0x41c   :  { %2851 = shalt.err (!%p2848_p0)
}
 0x41d   :  { %s2852_s19 = scalar_lea.hbm %s3120_s9, 128 }
 0x41e   :  { %p2853_p1 = scmp.ne.s32.totalorder %s3120_s9, %s2852_s19  ;;  %p2856_p2 = scmp.lt.u32.totalorder %s2852_s19, %s3120_s9 }
 0x420   :  { %p2858_p3 = pnand %p2856_p2, %p2853_p1 }
 0x422   :  { %2861 = shalt.err (!%p2858_p3)
}
 0x423   :  { %2140 = dma.vmem_to_hbm [thread:$0]  %s2138_s15, 128, %s3120_s9, [#allocation9]  }
 0x424   :  { %2866 = dma.done.wait [#allocation9], 128  }
 0x425   :  { %2867 = vsyncadd [#allocation9], 4294967168 }
 0x426   :  { %2144 = vsyncpa [#allocation8], 1 }
 0x427   :  { %2145 = vsyncpa [#allocation11], 1 }
 0x428   :  { %2146 = vsyncpa [#allocation9], 1 }

</bundles_post_ra>
